<compile_context>
chip_gen: v6e
topology: v6e:2x2x1
jax: 0.10.0
libtpu: 0.0.40
codegen_flags: <defaults>
</compile_context>

<pallas_src>
import functools
import math

import jax
import jax.numpy as jnp
from jax.experimental import pallas as pl
from jax.experimental.pallas import tpu as pltpu


def encoder_layer_kernel(x_ref, bias_ref,
                         wq_ref, bq_ref, wk_ref, bk_ref, wv_ref, bv_ref,
                         wo_ref, bo_ref, ln1g_ref, ln1b_ref,
                         w1_ref, b1_ref, w2_ref, b2_ref,
                         ln2g_ref, ln2b_ref,
                         out_ref,
                         q_buf, k_buf, v_buf, attn_buf,
                         *, batch_block, seq, num_heads, head_dim, eps):
    f32 = jnp.float32
    cdt = x_ref.dtype                      # matmul-operand dtype (f32 or bf16)
    rows = batch_block * seq               # flattened (batch_slab * time) rows

    x = x_ref[...]                         # (rows, E)

    # ---- QKV projections: one (rows,E)x(E,E) MXU matmul each, f32 accumulation ----
    # (q scaling is pre-folded into wq / bq by the wrapper)
    q = jnp.dot(x, wq_ref[...], preferred_element_type=f32) + bq_ref[...]
    k = jnp.dot(x, wk_ref[...], preferred_element_type=f32) + bk_ref[...]
    v = jnp.dot(x, wv_ref[...], preferred_element_type=f32) + bv_ref[...]
    q_buf[...] = q.reshape(batch_block, seq, -1).astype(cdt)
    k_buf[...] = k.reshape(batch_block, seq, -1).astype(cdt)
    v_buf[...] = v.reshape(batch_block, seq, -1).astype(cdt)

    # ---- multi-head attention: static head loop, batched over the whole batch slab ----
    for h in range(num_heads):
        sl = slice(h * head_dim, (h + 1) * head_dim)
        qh = q_buf[:, :, sl]                               # (Bb, T, hd)
        kh = k_buf[:, :, sl]
        vh = v_buf[:, :, sl]
        s = jnp.einsum('btd,bsd->bts', qh, kh,
                       preferred_element_type=f32)         # (Bb, T, T)
        s = s + bias_ref[h]                                # attn_bias + attn_mask + pad (combined)
        m = jnp.max(s, axis=-1, keepdims=True)
        p = jnp.exp(s - m)
        denom = jnp.sum(p, axis=-1, keepdims=True)
        p = p * pl.reciprocal(denom, approx=True)          # EUP reciprocal (VALU-free)
        o = jnp.einsum('bts,bsd->btd', p.astype(cdt), vh,
                       preferred_element_type=f32)         # (Bb, T, hd)
        # concat folded away: write this head's lane slice of the attention slab
        attn_buf[:, sl] = o.reshape(rows, head_dim).astype(cdt)

    # ---- out projection + residual + LayerNorm 1 (all rows at once, f32) ----
    a = jnp.dot(attn_buf[...], wo_ref[...], preferred_element_type=f32) + bo_ref[...]
    x1 = x.astype(f32) + a
    mu = jnp.mean(x1, axis=-1, keepdims=True)
    var = jnp.mean(jnp.square(x1 - mu), axis=-1, keepdims=True)
    x1 = (x1 - mu) * jax.lax.rsqrt(var + eps) * ln1g_ref[...] + ln1b_ref[...]

    # ---- FFN: fc1 -> relu -> fc2, residual + LayerNorm 2 ----
    hmid = jnp.dot(x1.astype(cdt), w1_ref[...], preferred_element_type=f32) + b1_ref[...]
    hmid = jnp.maximum(hmid, 0.0)
    y = jnp.dot(hmid.astype(cdt), w2_ref[...], preferred_element_type=f32) + b2_ref[...]
    x2 = x1 + y
    mu2 = jnp.mean(x2, axis=-1, keepdims=True)
    var2 = jnp.mean(jnp.square(x2 - mu2), axis=-1, keepdims=True)
    x2 = (x2 - mu2) * jax.lax.rsqrt(var2 + eps) * ln2g_ref[...] + ln2b_ref[...]

    out_ref[...] = x2.astype(out_ref.dtype)


def graphormer_encoder_layer(x_tbe, attn_bias, attn_mask, key_padding_mask, params,
                             *, compute_dtype=jnp.bfloat16, batch_block=None, eps=1e-5):
    """x_tbe: (T, B, E) like the PyTorch module.  Returns ((T, B, E), None)."""
    T, B, E = x_tbe.shape
    H = params["num_heads"]
    hd = E // H
    F = params["w1"].shape[1]
    cdt = jnp.dtype(compute_dtype)
    out_dtype = x_tbe.dtype

    if batch_block is None:
        batch_block = B
    assert B % batch_block == 0, "batch must be divisible by batch_block"
    n_slabs = B // batch_block
    rows_blk = batch_block * T

    # ---------- wrapper-side prep (cheap XLA ops, done once) ----------
    # flatten (T,B,E) -> (B*T, E): big-M row slab for all dense matmuls
    x2d = jnp.transpose(x_tbe, (1, 0, 2)).reshape(B * T, E).astype(cdt)

    # fold q scaling into the q projection
    scaling = hd ** -0.5
    f32 = jnp.float32
    wq = (params["wq"] * scaling).astype(cdt)
    bq = (params["bq"] * scaling).astype(f32)
    wk = params["wk"].astype(cdt); bk = params["bk"].astype(f32)
    wv = params["wv"].astype(cdt); bv = params["bv"].astype(f32)
    wo = params["wo"].astype(cdt); bo = params["bo"].astype(f32)
    w1 = params["w1"].astype(cdt); b1 = params["b1"].astype(f32)
    w2 = params["w2"].astype(cdt); b2 = params["b2"].astype(f32)
    ln1_g = params["ln1_g"].astype(f32); ln1_b = params["ln1_b"].astype(f32)
    ln2_g = params["ln2_g"].astype(f32); ln2_b = params["ln2_b"].astype(f32)

    # pre-combine all additive attention masks into one (H, B, T, T) tensor
    big_neg = -1e30                               # finite: avoids NaN on fully padded rows
    if attn_mask is None:
        am = jnp.zeros((T, T), f32)
    elif attn_mask.dtype == jnp.bool_:            # PyTorch bool mask: True == masked
        am = attn_mask.astype(f32) * big_neg
    else:
        am = attn_mask.astype(f32)
    bias = attn_bias.astype(f32) if attn_bias is not None else jnp.zeros((B, H, T, T), f32)
    pad = (key_padding_mask.astype(f32) if key_padding_mask is not None
           else jnp.zeros((B, T), f32))
    bias_comb = bias + am[None, None] + big_neg * pad[:, None, None, :]
    bias_comb = jnp.transpose(bias_comb, (1, 0, 2, 3))        # (H, B, T, T): head-major

    # ---------- specs ----------
    full2d = lambda shape: pl.BlockSpec(shape, lambda i: (0, 0))
    in_specs = [
        pl.BlockSpec((rows_blk, E), lambda i: (i, 0)),                # x slab
        pl.BlockSpec((H, batch_block, T, T), lambda i: (0, i, 0, 0)),  # combined bias
        full2d((E, E)), full2d((1, E)),       # wq, bq
        full2d((E, E)), full2d((1, E)),       # wk, bk
        full2d((E, E)), full2d((1, E)),       # wv, bv
        full2d((E, E)), full2d((1, E)),       # wo, bo
        full2d((1, E)), full2d((1, E)),       # ln1 gamma, beta
        full2d((E, F)), full2d((1, F)),       # w1, b1
        full2d((F, E)), full2d((1, E)),       # w2, b2
        full2d((1, E)), full2d((1, E)),       # ln2 gamma, beta
    ]

    kernel = functools.partial(encoder_layer_kernel, batch_block=batch_block, seq=T,
                               num_heads=H, head_dim=hd, eps=eps)

    # ---------- cost estimate + VMEM budget ----------
    nbytes = lambda a: int(a.size) * a.dtype.itemsize
    weight_bytes = sum(nbytes(a) for a in (wq, bq, wk, bk, wv, bv, wo, bo,
                                           ln1_g, ln1_b, w1, b1, w2, b2, ln2_g, ln2_b))
    flops = (2 * B * T * E * E * 4              # q, k, v, out projections
             + 2 * B * H * T * T * hd * 2       # scores + attn @ V
             + 2 * B * T * E * F * 2)           # fc1 + fc2
    transcendentals = B * H * T * T + B * H * T + 4 * B * T
    bytes_accessed = (weight_bytes + nbytes(x2d) + nbytes(bias_comb)
                      + B * T * E * jnp.dtype(out_dtype).itemsize)

    block_bytes = (rows_blk * E * cdt.itemsize
                   + H * batch_block * T * T * 4
                   + rows_blk * E * jnp.dtype(out_dtype).itemsize)
    scratch_bytes = 4 * rows_blk * E * cdt.itemsize
    vmem_est = 2 * (weight_bytes + block_bytes) + scratch_bytes + (2 << 20)
    vmem_limit = int(max(32 << 20, min(vmem_est, 100 << 20)))

    out2d = pl.pallas_call(
        kernel,
        out_shape=jax.ShapeDtypeStruct((B * T, E), out_dtype),
        grid=(n_slabs,),
        in_specs=in_specs,
        out_specs=pl.BlockSpec((rows_blk, E), lambda i: (i, 0)),
        scratch_shapes=[
            pltpu.VMEM((batch_block, T, E), cdt),   # q
            pltpu.VMEM((batch_block, T, E), cdt),   # k
            pltpu.VMEM((batch_block, T, E), cdt),   # v
            pltpu.VMEM((rows_blk, E), cdt),         # attention output slab
        ],
        compiler_params=pltpu.CompilerParams(
            dimension_semantics=("parallel",),
            vmem_limit_bytes=vmem_limit),
        cost_estimate=pl.CostEstimate(flops=int(flops),
                                      transcendentals=int(transcendentals),
                                      bytes_accessed=int(bytes_accessed)),
    )(x2d, bias_comb, wq, bq, wk, bk, wv, bv, wo, bo,
      ln1_g, ln1_b, w1, b1, w2, b2, ln2_g, ln2_b)

    out_tbe = jnp.transpose(out2d.reshape(B, T, E), (1, 0, 2))
    # need_weights=False in the module's self-attention call -> attn is None
    return out_tbe, None


def _reference(x_tbe, attn_bias, attn_mask, key_padding_mask, params, eps=1e-5):
    """Pure-JAX, module-faithful f32 forward pass (for correctness checking)."""
    T, B, E = x_tbe.shape
    H = params["num_heads"]; hd = E // H
    x = jnp.transpose(x_tbe, (1, 0, 2)).astype(jnp.float32)          # (B, T, E)

    q = (x @ params["wq"] + params["bq"]) * (hd ** -0.5)
    k = x @ params["wk"] + params["bk"]
    v = x @ params["wv"] + params["bv"]
    q = q.reshape(B, T, H, hd).transpose(0, 2, 1, 3)
    k = k.reshape(B, T, H, hd).transpose(0, 2, 1, 3)
    v = v.reshape(B, T, H, hd).transpose(0, 2, 1, 3)
    s = jnp.einsum("bhtd,bhsd->bhts", q, k)
    s = s + attn_bias + attn_mask[None, None]
    s = jnp.where(key_padding_mask[:, None, None, :], -jnp.inf, s)
    p = jax.nn.softmax(s, axis=-1)
    a = jnp.einsum("bhts,bhsd->bhtd", p, v).transpose(0, 2, 1, 3).reshape(B, T, E)
    a = a @ params["wo"] + params["bo"]

    def ln(z, g, b):
        mu = jnp.mean(z, -1, keepdims=True)
        var = jnp.mean((z - mu) ** 2, -1, keepdims=True)
        return (z - mu) * jax.lax.rsqrt(var + eps) * g + b

    x1 = ln(x + a, params["ln1_g"], params["ln1_b"])
    h = jnp.maximum(x1 @ params["w1"] + params["b1"], 0.0)
    h = h @ params["w2"] + params["b2"]
    x2 = ln(x1 + h, params["ln2_g"], params["ln2_b"])
    return jnp.transpose(x2, (1, 0, 2))


if __name__ == "__main__":
    # Small shapes consistent with the module: seq=8, batch=2, embed=32, heads=4, ffn=64
    T, B, E, H, F = 8, 2, 32, 4, 64

    key = jax.random.PRNGKey(0)
    ks = jax.random.split(key, 16)

    def xavier(k, shape, gain=1.0):
        fan_in, fan_out = shape
        a = gain * math.sqrt(6.0 / (fan_in + fan_out))
        return jax.random.uniform(k, shape, jnp.float32, -a, a)

    # weights stored as (in, out) so the kernel does x @ W + b
    params = {
        "num_heads": H,
        "wq": xavier(ks[0], (E, E), 1 / math.sqrt(2)), "bq": jnp.zeros((1, E), jnp.float32),
        "wk": xavier(ks[1], (E, E), 1 / math.sqrt(2)), "bk": jnp.zeros((1, E), jnp.float32),
        "wv": xavier(ks[2], (E, E), 1 / math.sqrt(2)), "bv": jnp.zeros((1, E), jnp.float32),
        "wo": xavier(ks[3], (E, E)),                   "bo": jnp.zeros((1, E), jnp.float32),
        "ln1_g": jnp.ones((1, E), jnp.float32), "ln1_b": jnp.zeros((1, E), jnp.float32),
        "w1": xavier(ks[4], (E, F)), "b1": 0.01 * jax.random.normal(ks[5], (1, F), jnp.float32),
        "w2": xavier(ks[6], (F, E)), "b2": 0.01 * jax.random.normal(ks[7], (1, E), jnp.float32),
        "ln2_g": jnp.ones((1, E), jnp.float32), "ln2_b": jnp.zeros((1, E), jnp.float32),
    }

    x = jax.random.normal(ks[8], (T, B, E), jnp.float32)              # (time, batch, embed)
    attn_bias = 0.1 * jax.random.normal(ks[9], (B, H, T, T), jnp.float32)
    attn_mask = 0.1 * jax.random.normal(ks[10], (T, T), jnp.float32)
    key_padding_mask = jnp.zeros((B, T), jnp.bool_).at[1, T - 1].set(True)

    ref = _reference(x, attn_bias, attn_mask, key_padding_mask, params)

    # f32 matmul-operand path (tolerance covers the approx. reciprocal in the softmax)
    out_f32, attn = graphormer_encoder_layer(
        x, attn_bias, attn_mask, key_padding_mask, params,
        compute_dtype=jnp.float32, batch_block=B)
    out_f32 = jax.block_until_ready(out_f32)
    assert out_f32.shape == (T, B, E)
    assert attn is None
    assert jnp.allclose(out_f32, ref, atol=2e-2, rtol=2e-2), "f32 kernel mismatch vs reference"

    # bf16 matmul-operand path (MXU/DMA-friendly on v5e/v6e/v7x; f32 accumulation)
    out_bf16, _ = graphormer_encoder_layer(
        x, attn_bias, attn_mask, key_padding_mask, params,
        compute_dtype=jnp.bfloat16, batch_block=B)
    out_bf16 = jax.block_until_ready(out_bf16)
    assert jnp.allclose(out_bf16.astype(jnp.float32), ref, atol=1e-1, rtol=1e-1), \
        "bf16 kernel mismatch vs reference"

    print("KERNEL_OK")
</pallas_src>

<mosaic_0001>
module attributes {stable_mosaic.version = 11 : i64} {
  func.func @encoder_layer_kernel(%arg0: i32, %arg1: memref<16x32xf32, #tpu.memory_space<vmem>>, %arg2: memref<4x2x8x8xf32, #tpu.memory_space<vmem>>, %arg3: memref<32x32xf32, #tpu.memory_space<vmem>>, %arg4: memref<1x32xf32, #tpu.memory_space<vmem>>, %arg5: memref<32x32xf32, #tpu.memory_space<vmem>>, %arg6: memref<1x32xf32, #tpu.memory_space<vmem>>, %arg7: memref<32x32xf32, #tpu.memory_space<vmem>>, %arg8: memref<1x32xf32, #tpu.memory_space<vmem>>, %arg9: memref<32x32xf32, #tpu.memory_space<vmem>>, %arg10: memref<1x32xf32, #tpu.memory_space<vmem>>, %arg11: memref<1x32xf32, #tpu.memory_space<vmem>>, %arg12: memref<1x32xf32, #tpu.memory_space<vmem>>, %arg13: memref<32x64xf32, #tpu.memory_space<vmem>>, %arg14: memref<1x64xf32, #tpu.memory_space<vmem>>, %arg15: memref<64x32xf32, #tpu.memory_space<vmem>>, %arg16: memref<1x32xf32, #tpu.memory_space<vmem>>, %arg17: memref<1x32xf32, #tpu.memory_space<vmem>>, %arg18: memref<1x32xf32, #tpu.memory_space<vmem>>, %arg19: memref<16x32xf32, #tpu.memory_space<vmem>>, %arg20: memref<2x8x32xf32, #tpu.memory_space<vmem>>, %arg21: memref<2x8x32xf32, #tpu.memory_space<vmem>>, %arg22: memref<2x8x32xf32, #tpu.memory_space<vmem>>, %arg23: memref<16x32xf32, #tpu.memory_space<vmem>>) attributes {dimension_semantics = [#tpu.dimension_semantics<parallel>], iteration_bounds = array<i64: 1>, scalar_prefetch = 0 : i64, scratch_operands = 4 : i64, tpu.core_type = #tpu.core_type<tc>, window_params = [{transform_indices = @transform_0, window_bounds = array<i64: 16, 32>}, {transform_indices = @transform_1, window_bounds = array<i64: 4, 2, 8, 8>}, {pipeline_mode = #tpu.pipeline_mode<synchronous>, transform_indices = @transform_2, window_bounds = array<i64: 32, 32>}, {pipeline_mode = #tpu.pipeline_mode<synchronous>, transform_indices = @transform_3, window_bounds = array<i64: 1, 32>}, {pipeline_mode = #tpu.pipeline_mode<synchronous>, transform_indices = @transform_4, window_bounds = array<i64: 32, 32>}, {pipeline_mode = #tpu.pipeline_mode<synchronous>, transform_indices = @transform_5, window_bounds = array<i64: 1, 32>}, {pipeline_mode = #tpu.pipeline_mode<synchronous>, transform_indices = @transform_6, window_bounds = array<i64: 32, 32>}, {pipeline_mode = #tpu.pipeline_mode<synchronous>, transform_indices = @transform_7, window_bounds = array<i64: 1, 32>}, {pipeline_mode = #tpu.pipeline_mode<synchronous>, transform_indices = @transform_8, window_bounds = array<i64: 32, 32>}, {pipeline_mode = #tpu.pipeline_mode<synchronous>, transform_indices = @transform_9, window_bounds = array<i64: 1, 32>}, {pipeline_mode = #tpu.pipeline_mode<synchronous>, transform_indices = @transform_10, window_bounds = array<i64: 1, 32>}, {pipeline_mode = #tpu.pipeline_mode<synchronous>, transform_indices = @transform_11, window_bounds = array<i64: 1, 32>}, {pipeline_mode = #tpu.pipeline_mode<synchronous>, transform_indices = @transform_12, window_bounds = array<i64: 32, 64>}, {pipeline_mode = #tpu.pipeline_mode<synchronous>, transform_indices = @transform_13, window_bounds = array<i64: 1, 64>}, {pipeline_mode = #tpu.pipeline_mode<synchronous>, transform_indices = @transform_14, window_bounds = array<i64: 64, 32>}, {pipeline_mode = #tpu.pipeline_mode<synchronous>, transform_indices = @transform_15, window_bounds = array<i64: 1, 32>}, {pipeline_mode = #tpu.pipeline_mode<synchronous>, transform_indices = @transform_16, window_bounds = array<i64: 1, 32>}, {pipeline_mode = #tpu.pipeline_mode<synchronous>, transform_indices = @transform_17, window_bounds = array<i64: 1, 32>}, {transform_indices = @transform_18, window_bounds = array<i64: 16, 32>}]} {
    %c0 = arith.constant 0 : index
    %c0_0 = arith.constant 0 : index
    %0 = vector.load %arg1[%c0, %c0_0] : memref<16x32xf32, #tpu.memory_space<vmem>>, vector<16x32xf32>
    %c0_1 = arith.constant 0 : index
    %c0_2 = arith.constant 0 : index
    %1 = vector.load %arg3[%c0_1, %c0_2] : memref<32x32xf32, #tpu.memory_space<vmem>>, vector<32x32xf32>
    %cst = arith.constant dense<0.000000e+00> : vector<16x32xf32>
    %2 = tpu.matmul %0, %1, %cst {dimension_numbers = #tpu.dot_dimension_numbers<[1], [0], [0], [1], [0, 0, 1, 1], [], []>} : vector<16x32xf32>, vector<32x32xf32>, vector<16x32xf32> -> vector<16x32xf32>
    %c0_3 = arith.constant 0 : index
    %c0_4 = arith.constant 0 : index
    %3 = vector.load %arg4[%c0_3, %c0_4] : memref<1x32xf32, #tpu.memory_space<vmem>>, vector<1x32xf32>
    %4 = vector.broadcast %3 : vector<1x32xf32> to vector<16x32xf32>
    %5 = arith.addf %2, %4 : vector<16x32xf32>
    %c0_5 = arith.constant 0 : index
    %c0_6 = arith.constant 0 : index
    %6 = vector.load %arg5[%c0_5, %c0_6] : memref<32x32xf32, #tpu.memory_space<vmem>>, vector<32x32xf32>
    %cst_7 = arith.constant dense<0.000000e+00> : vector<16x32xf32>
    %7 = tpu.matmul %0, %6, %cst_7 {dimension_numbers = #tpu.dot_dimension_numbers<[1], [0], [0], [1], [0, 0, 1, 1], [], []>} : vector<16x32xf32>, vector<32x32xf32>, vector<16x32xf32> -> vector<16x32xf32>
    %c0_8 = arith.constant 0 : index
    %c0_9 = arith.constant 0 : index
    %8 = vector.load %arg6[%c0_8, %c0_9] : memref<1x32xf32, #tpu.memory_space<vmem>>, vector<1x32xf32>
    %9 = vector.broadcast %8 : vector<1x32xf32> to vector<16x32xf32>
    %10 = arith.addf %7, %9 : vector<16x32xf32>
    %c0_10 = arith.constant 0 : index
    %c0_11 = arith.constant 0 : index
    %11 = vector.load %arg7[%c0_10, %c0_11] : memref<32x32xf32, #tpu.memory_space<vmem>>, vector<32x32xf32>
    %cst_12 = arith.constant dense<0.000000e+00> : vector<16x32xf32>
    %12 = tpu.matmul %0, %11, %cst_12 {dimension_numbers = #tpu.dot_dimension_numbers<[1], [0], [0], [1], [0, 0, 1, 1], [], []>} : vector<16x32xf32>, vector<32x32xf32>, vector<16x32xf32> -> vector<16x32xf32>
    %c0_13 = arith.constant 0 : index
    %c0_14 = arith.constant 0 : index
    %13 = vector.load %arg8[%c0_13, %c0_14] : memref<1x32xf32, #tpu.memory_space<vmem>>, vector<1x32xf32>
    %14 = vector.broadcast %13 : vector<1x32xf32> to vector<16x32xf32>
    %15 = arith.addf %12, %14 : vector<16x32xf32>
    %16 = vector.shape_cast %5 : vector<16x32xf32> to vector<2x8x32xf32>
    %c0_15 = arith.constant 0 : index
    %c0_16 = arith.constant 0 : index
    %c0_17 = arith.constant 0 : index
    %17 = vector.load %arg20[%c0_15, %c0_16, %c0_17] : memref<2x8x32xf32, #tpu.memory_space<vmem>>, vector<2x8x32xf32>
    tpu.vector_store %arg20[%c0_15, %c0_16, %c0_17], %16 {strides = array<i32>} : memref<2x8x32xf32, #tpu.memory_space<vmem>>, vector<2x8x32xf32>,
    %18 = vector.shape_cast %10 : vector<16x32xf32> to vector<2x8x32xf32>
    %c0_18 = arith.constant 0 : index
    %c0_19 = arith.constant 0 : index
    %c0_20 = arith.constant 0 : index
    %19 = vector.load %arg21[%c0_18, %c0_19, %c0_20] : memref<2x8x32xf32, #tpu.memory_space<vmem>>, vector<2x8x32xf32>
    tpu.vector_store %arg21[%c0_18, %c0_19, %c0_20], %18 {strides = array<i32>} : memref<2x8x32xf32, #tpu.memory_space<vmem>>, vector<2x8x32xf32>,
    %20 = vector.shape_cast %15 : vector<16x32xf32> to vector<2x8x32xf32>
    %c0_21 = arith.constant 0 : index
    %c0_22 = arith.constant 0 : index
    %c0_23 = arith.constant 0 : index
    %21 = vector.load %arg22[%c0_21, %c0_22, %c0_23] : memref<2x8x32xf32, #tpu.memory_space<vmem>>, vector<2x8x32xf32>
    tpu.vector_store %arg22[%c0_21, %c0_22, %c0_23], %20 {strides = array<i32>} : memref<2x8x32xf32, #tpu.memory_space<vmem>>, vector<2x8x32xf32>,
    %c0_24 = arith.constant 0 : index
    %c0_25 = arith.constant 0 : index
    %c0_26 = arith.constant 0 : index
    %22 = vector.load %arg20[%c0_24, %c0_25, %c0_26] : memref<2x8x32xf32, #tpu.memory_space<vmem>>, vector<2x8x8xf32>
    %c0_27 = arith.constant 0 : index
    %c0_28 = arith.constant 0 : index
    %c0_29 = arith.constant 0 : index
    %23 = vector.load %arg21[%c0_27, %c0_28, %c0_29] : memref<2x8x32xf32, #tpu.memory_space<vmem>>, vector<2x8x8xf32>
    %c0_30 = arith.constant 0 : index
    %c0_31 = arith.constant 0 : index
    %c0_32 = arith.constant 0 : index
    %24 = vector.load %arg22[%c0_30, %c0_31, %c0_32] : memref<2x8x32xf32, #tpu.memory_space<vmem>>, vector<2x8x8xf32>
    "tpu.trace_start"() <{level = 10 : i32, message = "btd,bsd->bts"}> : () -> ()
    %cst_33 = arith.constant dense<0.000000e+00> : vector<2x8x8xf32>
    %25 = tpu.matmul %22, %23, %cst_33 {dimension_numbers = #tpu.dot_dimension_numbers<[2], [2], [1], [1], [0, 0, 0, 1, 1, 1], [0], [0]>} : vector<2x8x8xf32>, vector<2x8x8xf32>, vector<2x8x8xf32> -> vector<2x8x8xf32>
    "tpu.trace_stop"() : () -> ()
    %c0_34 = arith.constant 0 : index
    %c0_35 = arith.constant 0 : index
    %c0_36 = arith.constant 0 : index
    %c0_37 = arith.constant 0 : index
    %26 = vector.load %arg2[%c0_34, %c0_35, %c0_36, %c0_37] : memref<4x2x8x8xf32, #tpu.memory_space<vmem>>, vector<1x2x8x8xf32>
    %27 = vector.shape_cast %26 : vector<1x2x8x8xf32> to vector<2x8x8xf32>
    %28 = arith.addf %25, %27 : vector<2x8x8xf32>
    %cst_38 = arith.constant dense<0xFF800000> : vector<2x8xf32>
    %29 = vector.multi_reduction <maximumf>, %28, %cst_38 [2] : vector<2x8x8xf32> to vector<2x8xf32>
    %30 = vector.shape_cast %29 : vector<2x8xf32> to vector<2x8x1xf32>
    %31 = vector.broadcast %30 : vector<2x8x1xf32> to vector<2x8x8xf32>
    %32 = arith.subf %28, %31 : vector<2x8x8xf32>
    %33 = math.exp %32 : vector<2x8x8xf32>
    %cst_39 = arith.constant dense<0.000000e+00> : vector<2x8xf32>
    %34 = vector.multi_reduction <add>, %33, %cst_39 [2] : vector<2x8x8xf32> to vector<2x8xf32>
    %35 = vector.shape_cast %34 : vector<2x8xf32> to vector<2x8x1xf32>
    %36 = tpu.reciprocal %35 {approx = true} : vector<2x8x1xf32> -> vector<2x8x1xf32>
    %37 = vector.broadcast %36 : vector<2x8x1xf32> to vector<2x8x8xf32>
    %38 = arith.mulf %33, %37 : vector<2x8x8xf32>
    "tpu.trace_start"() <{level = 10 : i32, message = "bts,bsd->btd"}> : () -> ()
    %cst_40 = arith.constant dense<0.000000e+00> : vector<2x8x8xf32>
    %39 = tpu.matmul %38, %24, %cst_40 {dimension_numbers = #tpu.dot_dimension_numbers<[2], [1], [1], [2], [0, 0, 0, 1, 1, 2], [0], [0]>} : vector<2x8x8xf32>, vector<2x8x8xf32>, vector<2x8x8xf32> -> vector<2x8x8xf32>
    "tpu.trace_stop"() : () -> ()
    %40 = vector.shape_cast %39 : vector<2x8x8xf32> to vector<16x8xf32>
    %c0_41 = arith.constant 0 : index
    %c0_42 = arith.constant 0 : index
    %41 = vector.load %arg23[%c0_41, %c0_42] : memref<16x32xf32, #tpu.memory_space<vmem>>, vector<16x8xf32>
    tpu.vector_store %arg23[%c0_41, %c0_42], %40 {strides = array<i32>} : memref<16x32xf32, #tpu.memory_space<vmem>>, vector<16x8xf32>,
    %c0_43 = arith.constant 0 : index
    %c0_44 = arith.constant 0 : index
    %c8 = arith.constant 8 : index
    %42 = vector.load %arg20[%c0_43, %c0_44, %c8] : memref<2x8x32xf32, #tpu.memory_space<vmem>>, vector<2x8x8xf32>
    %c0_45 = arith.constant 0 : index
    %c0_46 = arith.constant 0 : index
    %c8_47 = arith.constant 8 : index
    %43 = vector.load %arg21[%c0_45, %c0_46, %c8_47] : memref<2x8x32xf32, #tpu.memory_space<vmem>>, vector<2x8x8xf32>
    %c0_48 = arith.constant 0 : index
    %c0_49 = arith.constant 0 : index
    %c8_50 = arith.constant 8 : index
    %44 = vector.load %arg22[%c0_48, %c0_49, %c8_50] : memref<2x8x32xf32, #tpu.memory_space<vmem>>, vector<2x8x8xf32>
    "tpu.trace_start"() <{level = 10 : i32, message = "btd,bsd->bts"}> : () -> ()
    %cst_51 = arith.constant dense<0.000000e+00> : vector<2x8x8xf32>
    %45 = tpu.matmul %42, %43, %cst_51 {dimension_numbers = #tpu.dot_dimension_numbers<[2], [2], [1], [1], [0, 0, 0, 1, 1, 1], [0], [0]>} : vector<2x8x8xf32>, vector<2x8x8xf32>, vector<2x8x8xf32> -> vector<2x8x8xf32>
    "tpu.trace_stop"() : () -> ()
    %c1 = arith.constant 1 : index
    %c0_52 = arith.constant 0 : index
    %c0_53 = arith.constant 0 : index
    %c0_54 = arith.constant 0 : index
    %46 = vector.load %arg2[%c1, %c0_52, %c0_53, %c0_54] : memref<4x2x8x8xf32, #tpu.memory_space<vmem>>, vector<1x2x8x8xf32>
    %47 = vector.shape_cast %46 : vector<1x2x8x8xf32> to vector<2x8x8xf32>
    %48 = arith.addf %45, %47 : vector<2x8x8xf32>
    %cst_55 = arith.constant dense<0xFF800000> : vector<2x8xf32>
    %49 = vector.multi_reduction <maximumf>, %48, %cst_55 [2] : vector<2x8x8xf32> to vector<2x8xf32>
    %50 = vector.shape_cast %49 : vector<2x8xf32> to vector<2x8x1xf32>
    %51 = vector.broadcast %50 : vector<2x8x1xf32> to vector<2x8x8xf32>
    %52 = arith.subf %48, %51 : vector<2x8x8xf32>
    %53 = math.exp %52 : vector<2x8x8xf32>
    %cst_56 = arith.constant dense<0.000000e+00> : vector<2x8xf32>
    %54 = vector.multi_reduction <add>, %53, %cst_56 [2] : vector<2x8x8xf32> to vector<2x8xf32>
    %55 = vector.shape_cast %54 : vector<2x8xf32> to vector<2x8x1xf32>
    %56 = tpu.reciprocal %55 {approx = true} : vector<2x8x1xf32> -> vector<2x8x1xf32>
    %57 = vector.broadcast %56 : vector<2x8x1xf32> to vector<2x8x8xf32>
    %58 = arith.mulf %53, %57 : vector<2x8x8xf32>
    "tpu.trace_start"() <{level = 10 : i32, message = "bts,bsd->btd"}> : () -> ()
    %cst_57 = arith.constant dense<0.000000e+00> : vector<2x8x8xf32>
    %59 = tpu.matmul %58, %44, %cst_57 {dimension_numbers = #tpu.dot_dimension_numbers<[2], [1], [1], [2], [0, 0, 0, 1, 1, 2], [0], [0]>} : vector<2x8x8xf32>, vector<2x8x8xf32>, vector<2x8x8xf32> -> vector<2x8x8xf32>
    "tpu.trace_stop"() : () -> ()
    %60 = vector.shape_cast %59 : vector<2x8x8xf32> to vector<16x8xf32>
    %c0_58 = arith.constant 0 : index
    %c8_59 = arith.constant 8 : index
    %61 = vector.load %arg23[%c0_58, %c8_59] : memref<16x32xf32, #tpu.memory_space<vmem>>, vector<16x8xf32>
    tpu.vector_store %arg23[%c0_58, %c8_59], %60 {strides = array<i32>} : memref<16x32xf32, #tpu.memory_space<vmem>>, vector<16x8xf32>,
    %c0_60 = arith.constant 0 : index
    %c0_61 = arith.constant 0 : index
    %c16 = arith.constant 16 : index
    %62 = vector.load %arg20[%c0_60, %c0_61, %c16] : memref<2x8x32xf32, #tpu.memory_space<vmem>>, vector<2x8x8xf32>
    %c0_62 = arith.constant 0 : index
    %c0_63 = arith.constant 0 : index
    %c16_64 = arith.constant 16 : index
    %63 = vector.load %arg21[%c0_62, %c0_63, %c16_64] : memref<2x8x32xf32, #tpu.memory_space<vmem>>, vector<2x8x8xf32>
    %c0_65 = arith.constant 0 : index
    %c0_66 = arith.constant 0 : index
    %c16_67 = arith.constant 16 : index
    %64 = vector.load %arg22[%c0_65, %c0_66, %c16_67] : memref<2x8x32xf32, #tpu.memory_space<vmem>>, vector<2x8x8xf32>
    "tpu.trace_start"() <{level = 10 : i32, message = "btd,bsd->bts"}> : () -> ()
    %cst_68 = arith.constant dense<0.000000e+00> : vector<2x8x8xf32>
    %65 = tpu.matmul %62, %63, %cst_68 {dimension_numbers = #tpu.dot_dimension_numbers<[2], [2], [1], [1], [0, 0, 0, 1, 1, 1], [0], [0]>} : vector<2x8x8xf32>, vector<2x8x8xf32>, vector<2x8x8xf32> -> vector<2x8x8xf32>
    "tpu.trace_stop"() : () -> ()
    %c2 = arith.constant 2 : index
    %c0_69 = arith.constant 0 : index
    %c0_70 = arith.constant 0 : index
    %c0_71 = arith.constant 0 : index
    %66 = vector.load %arg2[%c2, %c0_69, %c0_70, %c0_71] : memref<4x2x8x8xf32, #tpu.memory_space<vmem>>, vector<1x2x8x8xf32>
    %67 = vector.shape_cast %66 : vector<1x2x8x8xf32> to vector<2x8x8xf32>
    %68 = arith.addf %65, %67 : vector<2x8x8xf32>
    %cst_72 = arith.constant dense<0xFF800000> : vector<2x8xf32>
    %69 = vector.multi_reduction <maximumf>, %68, %cst_72 [2] : vector<2x8x8xf32> to vector<2x8xf32>
    %70 = vector.shape_cast %69 : vector<2x8xf32> to vector<2x8x1xf32>
    %71 = vector.broadcast %70 : vector<2x8x1xf32> to vector<2x8x8xf32>
    %72 = arith.subf %68, %71 : vector<2x8x8xf32>
    %73 = math.exp %72 : vector<2x8x8xf32>
    %cst_73 = arith.constant dense<0.000000e+00> : vector<2x8xf32>
    %74 = vector.multi_reduction <add>, %73, %cst_73 [2] : vector<2x8x8xf32> to vector<2x8xf32>
    %75 = vector.shape_cast %74 : vector<2x8xf32> to vector<2x8x1xf32>
    %76 = tpu.reciprocal %75 {approx = true} : vector<2x8x1xf32> -> vector<2x8x1xf32>
    %77 = vector.broadcast %76 : vector<2x8x1xf32> to vector<2x8x8xf32>
    %78 = arith.mulf %73, %77 : vector<2x8x8xf32>
    "tpu.trace_start"() <{level = 10 : i32, message = "bts,bsd->btd"}> : () -> ()
    %cst_74 = arith.constant dense<0.000000e+00> : vector<2x8x8xf32>
    %79 = tpu.matmul %78, %64, %cst_74 {dimension_numbers = #tpu.dot_dimension_numbers<[2], [1], [1], [2], [0, 0, 0, 1, 1, 2], [0], [0]>} : vector<2x8x8xf32>, vector<2x8x8xf32>, vector<2x8x8xf32> -> vector<2x8x8xf32>
    "tpu.trace_stop"() : () -> ()
    %80 = vector.shape_cast %79 : vector<2x8x8xf32> to vector<16x8xf32>
    %c0_75 = arith.constant 0 : index
    %c16_76 = arith.constant 16 : index
    %81 = vector.load %arg23[%c0_75, %c16_76] : memref<16x32xf32, #tpu.memory_space<vmem>>, vector<16x8xf32>
    tpu.vector_store %arg23[%c0_75, %c16_76], %80 {strides = array<i32>} : memref<16x32xf32, #tpu.memory_space<vmem>>, vector<16x8xf32>,
    %c0_77 = arith.constant 0 : index
    %c0_78 = arith.constant 0 : index
    %c24 = arith.constant 24 : index
    %82 = vector.load %arg20[%c0_77, %c0_78, %c24] : memref<2x8x32xf32, #tpu.memory_space<vmem>>, vector<2x8x8xf32>
    %c0_79 = arith.constant 0 : index
    %c0_80 = arith.constant 0 : index
    %c24_81 = arith.constant 24 : index
    %83 = vector.load %arg21[%c0_79, %c0_80, %c24_81] : memref<2x8x32xf32, #tpu.memory_space<vmem>>, vector<2x8x8xf32>
    %c0_82 = arith.constant 0 : index
    %c0_83 = arith.constant 0 : index
    %c24_84 = arith.constant 24 : index
    %84 = vector.load %arg22[%c0_82, %c0_83, %c24_84] : memref<2x8x32xf32, #tpu.memory_space<vmem>>, vector<2x8x8xf32>
    "tpu.trace_start"() <{level = 10 : i32, message = "btd,bsd->bts"}> : () -> ()
    %cst_85 = arith.constant dense<0.000000e+00> : vector<2x8x8xf32>
    %85 = tpu.matmul %82, %83, %cst_85 {dimension_numbers = #tpu.dot_dimension_numbers<[2], [2], [1], [1], [0, 0, 0, 1, 1, 1], [0], [0]>} : vector<2x8x8xf32>, vector<2x8x8xf32>, vector<2x8x8xf32> -> vector<2x8x8xf32>
    "tpu.trace_stop"() : () -> ()
    %c3 = arith.constant 3 : index
    %c0_86 = arith.constant 0 : index
    %c0_87 = arith.constant 0 : index
    %c0_88 = arith.constant 0 : index
    %86 = vector.load %arg2[%c3, %c0_86, %c0_87, %c0_88] : memref<4x2x8x8xf32, #tpu.memory_space<vmem>>, vector<1x2x8x8xf32>
    %87 = vector.shape_cast %86 : vector<1x2x8x8xf32> to vector<2x8x8xf32>
    %88 = arith.addf %85, %87 : vector<2x8x8xf32>
    %cst_89 = arith.constant dense<0xFF800000> : vector<2x8xf32>
    %89 = vector.multi_reduction <maximumf>, %88, %cst_89 [2] : vector<2x8x8xf32> to vector<2x8xf32>
    %90 = vector.shape_cast %89 : vector<2x8xf32> to vector<2x8x1xf32>
    %91 = vector.broadcast %90 : vector<2x8x1xf32> to vector<2x8x8xf32>
    %92 = arith.subf %88, %91 : vector<2x8x8xf32>
    %93 = math.exp %92 : vector<2x8x8xf32>
    %cst_90 = arith.constant dense<0.000000e+00> : vector<2x8xf32>
    %94 = vector.multi_reduction <add>, %93, %cst_90 [2] : vector<2x8x8xf32> to vector<2x8xf32>
    %95 = vector.shape_cast %94 : vector<2x8xf32> to vector<2x8x1xf32>
    %96 = tpu.reciprocal %95 {approx = true} : vector<2x8x1xf32> -> vector<2x8x1xf32>
    %97 = vector.broadcast %96 : vector<2x8x1xf32> to vector<2x8x8xf32>
    %98 = arith.mulf %93, %97 : vector<2x8x8xf32>
    "tpu.trace_start"() <{level = 10 : i32, message = "bts,bsd->btd"}> : () -> ()
    %cst_91 = arith.constant dense<0.000000e+00> : vector<2x8x8xf32>
    %99 = tpu.matmul %98, %84, %cst_91 {dimension_numbers = #tpu.dot_dimension_numbers<[2], [1], [1], [2], [0, 0, 0, 1, 1, 2], [0], [0]>} : vector<2x8x8xf32>, vector<2x8x8xf32>, vector<2x8x8xf32> -> vector<2x8x8xf32>
    "tpu.trace_stop"() : () -> ()
    %100 = vector.shape_cast %99 : vector<2x8x8xf32> to vector<16x8xf32>
    %c0_92 = arith.constant 0 : index
    %c24_93 = arith.constant 24 : index
    %101 = vector.load %arg23[%c0_92, %c24_93] : memref<16x32xf32, #tpu.memory_space<vmem>>, vector<16x8xf32>
    tpu.vector_store %arg23[%c0_92, %c24_93], %100 {strides = array<i32>} : memref<16x32xf32, #tpu.memory_space<vmem>>, vector<16x8xf32>,
    %c0_94 = arith.constant 0 : index
    %c0_95 = arith.constant 0 : index
    %102 = vector.load %arg23[%c0_94, %c0_95] : memref<16x32xf32, #tpu.memory_space<vmem>>, vector<16x32xf32>
    %c0_96 = arith.constant 0 : index
    %c0_97 = arith.constant 0 : index
    %103 = vector.load %arg9[%c0_96, %c0_97] : memref<32x32xf32, #tpu.memory_space<vmem>>, vector<32x32xf32>
    %cst_98 = arith.constant dense<0.000000e+00> : vector<16x32xf32>
    %104 = tpu.matmul %102, %103, %cst_98 {dimension_numbers = #tpu.dot_dimension_numbers<[1], [0], [0], [1], [0, 0, 1, 1], [], []>} : vector<16x32xf32>, vector<32x32xf32>, vector<16x32xf32> -> vector<16x32xf32>
    %c0_99 = arith.constant 0 : index
    %c0_100 = arith.constant 0 : index
    %105 = vector.load %arg10[%c0_99, %c0_100] : memref<1x32xf32, #tpu.memory_space<vmem>>, vector<1x32xf32>
    %106 = vector.broadcast %105 : vector<1x32xf32> to vector<16x32xf32>
    %107 = arith.addf %104, %106 : vector<16x32xf32>
    %108 = arith.addf %0, %107 : vector<16x32xf32>
    %cst_101 = arith.constant dense<0.000000e+00> : vector<16xf32>
    %109 = vector.multi_reduction <add>, %108, %cst_101 [1] : vector<16x32xf32> to vector<16xf32>
    %110 = vector.shape_cast %109 : vector<16xf32> to vector<16x1xf32>
    %cst_102 = arith.constant 3.200000e+01 : f32
    %111 = vector.broadcast %cst_102 : f32 to vector<16x1xf32>
    %112 = arith.divf %110, %111 : vector<16x1xf32>
    %113 = vector.broadcast %112 : vector<16x1xf32> to vector<16x32xf32>
    %114 = arith.subf %108, %113 : vector<16x32xf32>
    %115 = arith.mulf %114, %114 : vector<16x32xf32>
    %cst_103 = arith.constant dense<0.000000e+00> : vector<16xf32>
    %116 = vector.multi_reduction <add>, %115, %cst_103 [1] : vector<16x32xf32> to vector<16xf32>
    %117 = vector.shape_cast %116 : vector<16xf32> to vector<16x1xf32>
    %cst_104 = arith.constant 3.200000e+01 : f32
    %118 = vector.broadcast %cst_104 : f32 to vector<16x1xf32>
    %119 = arith.divf %117, %118 : vector<16x1xf32>
    %120 = vector.broadcast %112 : vector<16x1xf32> to vector<16x32xf32>
    %121 = arith.subf %108, %120 : vector<16x32xf32>
    %cst_105 = arith.constant 9.99999974E-6 : f32
    %122 = vector.broadcast %cst_105 : f32 to vector<16x1xf32>
    %123 = arith.addf %119, %122 : vector<16x1xf32>
    %124 = math.rsqrt %123 : vector<16x1xf32>
    %125 = vector.broadcast %124 : vector<16x1xf32> to vector<16x32xf32>
    %126 = arith.mulf %121, %125 : vector<16x32xf32>
    %c0_106 = arith.constant 0 : index
    %c0_107 = arith.constant 0 : index
    %127 = vector.load %arg11[%c0_106, %c0_107] : memref<1x32xf32, #tpu.memory_space<vmem>>, vector<1x32xf32>
    %128 = vector.broadcast %127 : vector<1x32xf32> to vector<16x32xf32>
    %129 = arith.mulf %126, %128 : vector<16x32xf32>
    %c0_108 = arith.constant 0 : index
    %c0_109 = arith.constant 0 : index
    %130 = vector.load %arg12[%c0_108, %c0_109] : memref<1x32xf32, #tpu.memory_space<vmem>>, vector<1x32xf32>
    %131 = vector.broadcast %130 : vector<1x32xf32> to vector<16x32xf32>
    %132 = arith.addf %129, %131 : vector<16x32xf32>
    %c0_110 = arith.constant 0 : index
    %c0_111 = arith.constant 0 : index
    %133 = vector.load %arg13[%c0_110, %c0_111] : memref<32x64xf32, #tpu.memory_space<vmem>>, vector<32x64xf32>
    %cst_112 = arith.constant dense<0.000000e+00> : vector<16x64xf32>
    %134 = tpu.matmul %132, %133, %cst_112 {dimension_numbers = #tpu.dot_dimension_numbers<[1], [0], [0], [1], [0, 0, 1, 1], [], []>} : vector<16x32xf32>, vector<32x64xf32>, vector<16x64xf32> -> vector<16x64xf32>
    %c0_113 = arith.constant 0 : index
    %c0_114 = arith.constant 0 : index
    %135 = vector.load %arg14[%c0_113, %c0_114] : memref<1x64xf32, #tpu.memory_space<vmem>>, vector<1x64xf32>
    %136 = vector.broadcast %135 : vector<1x64xf32> to vector<16x64xf32>
    %137 = arith.addf %134, %136 : vector<16x64xf32>
    %cst_115 = arith.constant 0.000000e+00 : f32
    %138 = vector.broadcast %cst_115 : f32 to vector<16x64xf32>
    %139 = arith.maximumf %137, %138 : vector<16x64xf32>
    %c0_116 = arith.constant 0 : index
    %c0_117 = arith.constant 0 : index
    %140 = vector.load %arg15[%c0_116, %c0_117] : memref<64x32xf32, #tpu.memory_space<vmem>>, vector<64x32xf32>
    %cst_118 = arith.constant dense<0.000000e+00> : vector<16x32xf32>
    %141 = tpu.matmul %139, %140, %cst_118 {dimension_numbers = #tpu.dot_dimension_numbers<[1], [0], [0], [1], [0, 0, 1, 1], [], []>} : vector<16x64xf32>, vector<64x32xf32>, vector<16x32xf32> -> vector<16x32xf32>
    %c0_119 = arith.constant 0 : index
    %c0_120 = arith.constant 0 : index
    %142 = vector.load %arg16[%c0_119, %c0_120] : memref<1x32xf32, #tpu.memory_space<vmem>>, vector<1x32xf32>
    %143 = vector.broadcast %142 : vector<1x32xf32> to vector<16x32xf32>
    %144 = arith.addf %141, %143 : vector<16x32xf32>
    %145 = arith.addf %132, %144 : vector<16x32xf32>
    %cst_121 = arith.constant dense<0.000000e+00> : vector<16xf32>
    %146 = vector.multi_reduction <add>, %145, %cst_121 [1] : vector<16x32xf32> to vector<16xf32>
    %147 = vector.shape_cast %146 : vector<16xf32> to vector<16x1xf32>
    %cst_122 = arith.constant 3.200000e+01 : f32
    %148 = vector.broadcast %cst_122 : f32 to vector<16x1xf32>
    %149 = arith.divf %147, %148 : vector<16x1xf32>
    %150 = vector.broadcast %149 : vector<16x1xf32> to vector<16x32xf32>
    %151 = arith.subf %145, %150 : vector<16x32xf32>
    %152 = arith.mulf %151, %151 : vector<16x32xf32>
    %cst_123 = arith.constant dense<0.000000e+00> : vector<16xf32>
    %153 = vector.multi_reduction <add>, %152, %cst_123 [1] : vector<16x32xf32> to vector<16xf32>
    %154 = vector.shape_cast %153 : vector<16xf32> to vector<16x1xf32>
    %cst_124 = arith.constant 3.200000e+01 : f32
    %155 = vector.broadcast %cst_124 : f32 to vector<16x1xf32>
    %156 = arith.divf %154, %155 : vector<16x1xf32>
    %157 = vector.broadcast %149 : vector<16x1xf32> to vector<16x32xf32>
    %158 = arith.subf %145, %157 : vector<16x32xf32>
    %cst_125 = arith.constant 9.99999974E-6 : f32
    %159 = vector.broadcast %cst_125 : f32 to vector<16x1xf32>
    %160 = arith.addf %156, %159 : vector<16x1xf32>
    %161 = math.rsqrt %160 : vector<16x1xf32>
    %162 = vector.broadcast %161 : vector<16x1xf32> to vector<16x32xf32>
    %163 = arith.mulf %158, %162 : vector<16x32xf32>
    %c0_126 = arith.constant 0 : index
    %c0_127 = arith.constant 0 : index
    %164 = vector.load %arg17[%c0_126, %c0_127] : memref<1x32xf32, #tpu.memory_space<vmem>>, vector<1x32xf32>
    %165 = vector.broadcast %164 : vector<1x32xf32> to vector<16x32xf32>
    %166 = arith.mulf %163, %165 : vector<16x32xf32>
    %c0_128 = arith.constant 0 : index
    %c0_129 = arith.constant 0 : index
    %167 = vector.load %arg18[%c0_128, %c0_129] : memref<1x32xf32, #tpu.memory_space<vmem>>, vector<1x32xf32>
    %168 = vector.broadcast %167 : vector<1x32xf32> to vector<16x32xf32>
    %169 = arith.addf %166, %168 : vector<16x32xf32>
    %c0_130 = arith.constant 0 : index
    %c0_131 = arith.constant 0 : index
    %170 = vector.load %arg19[%c0_130, %c0_131] : memref<16x32xf32, #tpu.memory_space<vmem>>, vector<16x32xf32>
    tpu.vector_store %arg19[%c0_130, %c0_131], %169 {strides = array<i32>} : memref<16x32xf32, #tpu.memory_space<vmem>>, vector<16x32xf32>,
    return
  }
  func.func @transform_0(%arg0: i32) -> (i32, i32) {
    %c0_i32 = arith.constant 0 : i32
    %c0_i32_0 = arith.constant 0 : i32
    return %arg0, %c0_i32 : i32, i32
  }
  func.func @transform_1(%arg0: i32) -> (i32, i32, i32, i32) {
    %c0_i32 = arith.constant 0 : i32
    %c0_i32_0 = arith.constant 0 : i32
    %c0_i32_1 = arith.constant 0 : i32
    %c0_i32_2 = arith.constant 0 : i32
    return %c0_i32, %arg0, %c0_i32_0, %c0_i32_1 : i32, i32, i32, i32
  }
  func.func @transform_2(%arg0: i32) -> (i32, i32) {
    %c0_i32 = arith.constant 0 : i32
    %c0_i32_0 = arith.constant 0 : i32
    %c0_i32_1 = arith.constant 0 : i32
    return %c0_i32, %c0_i32_0 : i32, i32
  }
  func.func @transform_3(%arg0: i32) -> (i32, i32) {
    %c0_i32 = arith.constant 0 : i32
    %c0_i32_0 = arith.constant 0 : i32
    %c0_i32_1 = arith.constant 0 : i32
    return %c0_i32, %c0_i32_0 : i32, i32
  }
  func.func @transform_4(%arg0: i32) -> (i32, i32) {
    %c0_i32 = arith.constant 0 : i32
    %c0_i32_0 = arith.constant 0 : i32
    %c0_i32_1 = arith.constant 0 : i32
    return %c0_i32, %c0_i32_0 : i32, i32
  }
  func.func @transform_5(%arg0: i32) -> (i32, i32) {
    %c0_i32 = arith.constant 0 : i32
    %c0_i32_0 = arith.constant 0 : i32
    %c0_i32_1 = arith.constant 0 : i32
    return %c0_i32, %c0_i32_0 : i32, i32
  }
  func.func @transform_6(%arg0: i32) -> (i32, i32) {
    %c0_i32 = arith.constant 0 : i32
    %c0_i32_0 = arith.constant 0 : i32
    %c0_i32_1 = arith.constant 0 : i32
    return %c0_i32, %c0_i32_0 : i32, i32
  }
  func.func @transform_7(%arg0: i32) -> (i32, i32) {
    %c0_i32 = arith.constant 0 : i32
    %c0_i32_0 = arith.constant 0 : i32
    %c0_i32_1 = arith.constant 0 : i32
    return %c0_i32, %c0_i32_0 : i32, i32
  }
  func.func @transform_8(%arg0: i32) -> (i32, i32) {
    %c0_i32 = arith.constant 0 : i32
    %c0_i32_0 = arith.constant 0 : i32
    %c0_i32_1 = arith.constant 0 : i32
    return %c0_i32, %c0_i32_0 : i32, i32
  }
  func.func @transform_9(%arg0: i32) -> (i32, i32) {
    %c0_i32 = arith.constant 0 : i32
    %c0_i32_0 = arith.constant 0 : i32
    %c0_i32_1 = arith.constant 0 : i32
    return %c0_i32, %c0_i32_0 : i32, i32
  }
  func.func @transform_10(%arg0: i32) -> (i32, i32) {
    %c0_i32 = arith.constant 0 : i32
    %c0_i32_0 = arith.constant 0 : i32
    %c0_i32_1 = arith.constant 0 : i32
    return %c0_i32, %c0_i32_0 : i32, i32
  }
  func.func @transform_11(%arg0: i32) -> (i32, i32) {
    %c0_i32 = arith.constant 0 : i32
    %c0_i32_0 = arith.constant 0 : i32
    %c0_i32_1 = arith.constant 0 : i32
    return %c0_i32, %c0_i32_0 : i32, i32
  }
  func.func @transform_12(%arg0: i32) -> (i32, i32) {
    %c0_i32 = arith.constant 0 : i32
    %c0_i32_0 = arith.constant 0 : i32
    %c0_i32_1 = arith.constant 0 : i32
    return %c0_i32, %c0_i32_0 : i32, i32
  }
  func.func @transform_13(%arg0: i32) -> (i32, i32) {
    %c0_i32 = arith.constant 0 : i32
    %c0_i32_0 = arith.constant 0 : i32
    %c0_i32_1 = arith.constant 0 : i32
    return %c0_i32, %c0_i32_0 : i32, i32
  }
  func.func @transform_14(%arg0: i32) -> (i32, i32) {
    %c0_i32 = arith.constant 0 : i32
    %c0_i32_0 = arith.constant 0 : i32
    %c0_i32_1 = arith.constant 0 : i32
    return %c0_i32, %c0_i32_0 : i32, i32
  }
  func.func @transform_15(%arg0: i32) -> (i32, i32) {
    %c0_i32 = arith.constant 0 : i32
    %c0_i32_0 = arith.constant 0 : i32
    %c0_i32_1 = arith.constant 0 : i32
    return %c0_i32, %c0_i32_0 : i32, i32
  }
  func.func @transform_16(%arg0: i32) -> (i32, i32) {
    %c0_i32 = arith.constant 0 : i32
    %c0_i32_0 = arith.constant 0 : i32
    %c0_i32_1 = arith.constant 0 : i32
    return %c0_i32, %c0_i32_0 : i32, i32
  }
  func.func @transform_17(%arg0: i32) -> (i32, i32) {
    %c0_i32 = arith.constant 0 : i32
    %c0_i32_0 = arith.constant 0 : i32
    %c0_i32_1 = arith.constant 0 : i32
    return %c0_i32, %c0_i32_0 : i32, i32
  }
  func.func @transform_18(%arg0: i32) -> (i32, i32) {
    %c0_i32 = arith.constant 0 : i32
    %c0_i32_0 = arith.constant 0 : i32
    return %arg0, %c0_i32 : i32, i32
  }
}

</mosaic_0001>

<bundles_post_ra>
// kernel: tpu_custom_call.1
= control target key start
LH: loop header
LB: loop body
LE: loop exit
PB: predicated region body
PF: predicated region fallthrough
CT: control target
= control target key end

     0   :  { %s3088_s0 = inlined_call_operand.hbm [shape: f32[16,32], index: 0, kind: input, shape index: {}]   ;;  %s3089_s1 = inlined_call_operand.vmem [shape: f32[4,2,8,8], index: 1, kind: input, shape index: {}]   ;;  %s3090_s2 = inlined_call_operand.vmem [shape: f32[32,32], index: 2, kind: input, shape index: {}]   ;;  %s3091_s3 = inlined_call_operand.vmem [shape: f32[1,32], index: 3, kind: input, shape index: {}]   ;;  %s3092_s4 = inlined_call_operand.hbm [shape: f32[32,32], index: 4, kind: input, shape index: {}]   ;;  %s3093_s5 = inlined_call_operand.vmem [shape: f32[1,32], index: 5, kind: input, shape index: {}]   ;;  %s3094_s6 = inlined_call_operand.hbm [shape: f32[32,32], index: 6, kind: input, shape index: {}]   ;;  %s3095_s7 = inlined_call_operand.vmem [shape: f32[1,32], index: 7, kind: input, shape index: {}]   ;;  %s3096_s8 = inlined_call_operand.hbm [shape: f32[32,32], index: 8, kind: input, shape index: {}]   ;;  %s3097_s9 = inlined_call_operand.vmem [shape: f32[1,32], index: 9, kind: input, shape index: {}]   ;;  %s3098_s10 = inlined_call_operand.vmem [shape: f32[1,32], index: 10, kind: input, shape index: {}]   ;;  %s3099_s11 = inlined_call_operand.vmem [shape: f32[1,32], index: 11, kind: input, shape index: {}]   ;;  %s3100_s12 = inlined_call_operand.hbm [shape: f32[32,64], index: 12, kind: input, shape index: {}]   ;;  %s3101_s13 = inlined_call_operand.vmem [shape: f32[1,64], index: 13, kind: input, shape index: {}]   ;;  %s3102_s14 = inlined_call_operand.vmem [shape: f32[64,32], index: 14, kind: input, shape index: {}]   ;;  %s3103_s15 = inlined_call_operand.vmem [shape: f32[1,32], index: 15, kind: input, shape index: {}]   ;;  %s3104_s16 = inlined_call_operand.vmem [shape: f32[1,32], index: 16, kind: input, shape index: {}]   ;;  %s3105_s17 = inlined_call_operand.vmem [shape: f32[1,32], index: 17, kind: input, shape index: {}]   ;;  %s3106_s18 = inlined_call_operand.hbm [shape: f32[16,32], index: 18, kind: output, shape index: {}]  }
   0x1   :  { %3109 = sst [smem:[#allocation20_spill]] %s3088_s0 }
   0x2   :  { %3110 = sst [smem:[#allocation21_spill]] %s3089_s1 }
   0x3   :  { %3111 = sst [smem:[#allocation22_spill]] %s3090_s2 }
   0x4   :  { %23 = vsyncpa [#allocation7], 0 }
   0x5   :  { %24 = vsyncpa [#allocation10], 0 }
   0x6   :  { %25 = vsyncpa [#allocation13], 0 }
   0x7   :  { %26 = vsyncpa [#allocation8], 0  ;;  %s2660_s27 = smov [#allocation9]   ;;  %s2661_s29 = smov [#allocation12]  }
   0x8   :  { %s50_s28 = sshll.u32 %s2660_s27, 4  ;;  %s78_s30 = sshll.u32 %s2661_s29, 4  ;;  %s51_s28 = int_to_ptr.vmem [resolvable:$true] %s50_s28  ;;  %s79_s30 = int_to_ptr.vmem [resolvable:$true] %s78_s30 }
   0x9   :  { %s2540_s0 = scalar_lea.vmem %s51_s28, 512  ;;  %p2545_p1 = scmp.lt.s32.totalorder %s51_s28, %s51_s28 }
   0xa   :  { %p2541_p0 = scmp.ne.s32.totalorder %s51_s28, %s2540_s0  ;;  %p2546_p2 = scmp.lt.s32.totalorder %s2540_s0, %s2540_s0 }
   0xc   :  { %p2547_p3 = por %p2546_p2, %p2545_p1 }
   0xe   :  { %p2548_p4 = pnand %p2547_p3, %p2541_p0 }
  0x10   :  { %2551 = shalt.err (!%p2548_p4)
}
  0x11   :  { %s2662_s19 = smov 128   ;;  %s2663_s1 = smov 8  }
  0x12   :  { %56 = dma.hbm_to_vmem [thread:$0]  %s3092_s4, 512, %s51_s28, [#allocation10], %s2662_s19, %s2662_s19, %s2663_s1  }
  0x13   :  { %s2560_s22 = scalar_lea.vmem %s79_s30, 512  ;;  %p2565_p6 = scmp.lt.s32.totalorder %s79_s30, %s79_s30 }
  0x14   :  { %p2561_p5 = scmp.ne.s32.totalorder %s79_s30, %s2560_s22  ;;  %p2566_p7 = scmp.lt.s32.totalorder %s2560_s22, %s2560_s22 }
  0x16   :  { %p2567_p8 = por %p2566_p7, %p2565_p6 }
  0x18   :  { %p2568_p9 = pnand %p2567_p8, %p2561_p5 }
  0x1a   :  { %2571 = shalt.err (!%p2568_p9)
}
  0x1b   :  { %84 = dma.hbm_to_vmem [thread:$0]  %s3096_s8, 512, %s79_s30, [#allocation13], %s2662_s19, %s2662_s19, %s2663_s1  }
  0x1c   :  { %s2664_s24 = smov [#allocation6]   ;;  %s2665_s26 = smov [#allocation11]  }
  0x1d   :  { %s32_s25 = sshll.u32 %s2664_s24, 4  ;;  %s64_s27 = sshll.u32 %s2665_s26, 4  ;;  %s33_s25 = int_to_ptr.vmem [resolvable:$true] %s32_s25  ;;  %s65_s27 = int_to_ptr.vmem [resolvable:$true] %s64_s27 }
  0x1e   :  { %s2580_s4 = scalar_lea.vmem %s33_s25, 256  ;;  %p2585_p11 = scmp.lt.s32.totalorder %s33_s25, %s33_s25 }
  0x1f   :  { %p2581_p10 = scmp.ne.s32.totalorder %s33_s25, %s2580_s4  ;;  %p2586_p12 = scmp.lt.s32.totalorder %s2580_s4, %s2580_s4 }
  0x21   :  { %p2587_p13 = por %p2586_p12, %p2585_p11 }
  0x23   :  { %p2588_p0 = pnand %p2587_p13, %p2581_p10 }
  0x25   :  { %2591 = shalt.err (!%p2588_p0)
}
  0x26   :  { %s3112_s0 = sld [smem:[#allocation20_spill]]  ;;  %s2600_s8 = scalar_lea.vmem %s65_s27, 512 }
  0x27   :  { %p2601_p1 = scmp.ne.s32.totalorder %s65_s27, %s2600_s8  ;;  %p2605_p2 = scmp.lt.s32.totalorder %s65_s27, %s65_s27 }
  0x28   :  { %p2606_p3 = scmp.lt.s32.totalorder %s2600_s8, %s2600_s8 }
  0x2a   :  { %p2607_p4 = por %p2606_p3, %p2605_p2 }
  0x2c   :  { %38 = dma.hbm_to_vmem [thread:$0]  %s3112_s0, 256, %s33_s25, [#allocation7], %s2662_s19, %s2662_s19, %s2663_s1  }
  0x2d   :  { %p2608_p5 = pnand %p2607_p4, %p2601_p1 }
  0x2f   :  { %2611 = shalt.err (!%p2608_p5)
}
  0x30   :  { %70 = dma.hbm_to_vmem [thread:$0]  %s3094_s6, 512, %s65_s27, [#allocation10], %s2662_s19, %s2662_s19, %s2663_s1  }
  0x31   :  { %s2666_s21 = smov [#allocation14]  }
  0x32   :  { %s96_s22 = sshll.u32 %s2666_s21, 4  ;;  %s97_s22 = int_to_ptr.vmem [resolvable:$true] %s96_s22 }
  0x33   :  { %s2620_s2 = scalar_lea.vmem %s97_s22, 512  ;;  %p2625_p7 = scmp.lt.s32.totalorder %s97_s22, %s97_s22 }
  0x34   :  { %p2621_p6 = scmp.ne.s32.totalorder %s97_s22, %s2620_s2  ;;  %p2626_p8 = scmp.lt.s32.totalorder %s2620_s2, %s2620_s2 }
  0x36   :  { %p2627_p9 = por %p2626_p8, %p2625_p7 }
  0x38   :  { %p2628_p10 = pnand %p2627_p9, %p2621_p6 }
  0x3a   :  { %2631 = shalt.err (!%p2628_p10)
}
  0x3b   :  { %102 = dma.hbm_to_vmem [thread:$0]  %s3100_s12, 512, %s97_s22, [#allocation13], %s2662_s19, %s2662_s19, %s2663_s1  }
  0x3c   :  { %2652 = dma.done.wait [#allocation7], 256  }
  0x3d   :  { %2653 = vsyncadd [#allocation7], 4294967040 }
  0x3e   :  { %2654 = dma.done.wait [#allocation10], 1024  }
  0x3f   :  { %2655 = vsyncadd [#allocation10], 4294966272 }
  0x40   :  { %2656 = dma.done.wait [#allocation13], 1024  }
  0x41   :  { %2657 = vsyncadd [#allocation13], 4294966272  ;;  %vm141_vm0 = vcmask 261120   ;;  %s3113_s26 = sld [smem:[#allocation22_spill]]  ;;  %v2806_v2 = vld [vmem:[#allocation6] sm:$0xff]  ;;  %v2818_v5 = vld [vmem:[#allocation6 + $0x8] sm:$0xff] }
  0x42   :  { %2331 = vmatprep.mubr.msk.f32.mxu1 %vm141_vm0, %v2806_v2  ;;  %2353 = vmatprep.mubr.msk.f32.mxu0 %vm141_vm0, %v2806_v2  ;;  %v226_v6 = vld [vmem:[#allocation9 + $0x18] sm:$0xff]  ;;  %v225_v7 = vld [vmem:[#allocation9 + $0x10] sm:$0xff]  ;;  %v224_v8 = vld [vmem:[#allocation9 + $0x8] sm:$0xff]  ;;  %v2667_v10 = vmov 0.0   ;;  %vm2668_vm1 = vmmov 0   ;;  %vm409_vm2 = vcmask 64512  }
  0x43   :  { %v223_v9 = vld [vmem:[#allocation9] sm:$0xff]  ;;  %v2199_v11 = vld [vmem:[%s3091_s3] ss:$0 sm:$0xff]  ;;  %s2669_s3 = smov 120   ;;  %v312_v25 = vld [vmem:[#allocation11 + $0x18] sm:$0xff]  ;;  %s3114_s2 = sld [smem:[#allocation21_spill]] }
  0x44   :  { %v2202_v16 = vld [vmem:[%s3093_s5] ss:$0 sm:$0xff]  ;;  %2345 = vmatprep.subr.mxu0 %v312_v25  ;;  %v310_v27 = vld [vmem:[#allocation11 + $0x8] sm:$0xff]  ;;  %v309_v28 = vld [vmem:[#allocation11] sm:$0xff]  ;;  %s2670_s12 = smov 112   ;;  %s2671_s30 = smov 104  }
  0x45   :  { %v311_v26 = vld [vmem:[#allocation11 + $0x10] sm:$0xff]  ;;  %2346 = vmatpush3.msra.mxu0 %v312_v25  ;;  %s2672_s22 = smov 16   ;;  %vm1085_vm3 = vcmask 130112   ;;  %vm1441_vm4 = vcmask 195712   ;;  %vm1797_vm5 = vcmask 261312   ;;  %vm2050_vm6 = vcmask 523264  }
  0x46   :  { %2347 = vmatprep.subr.mxu0 %v311_v26  ;;  %v2205_v39 = vld [vmem:[%s3095_s7] ss:$0 sm:$0xff]  ;;  %s2674_s25 = smov [#allocation15]  }
  0x47   :  { %v133_v0 = vld [vmem:[%s3113_s26 + $0x18] sm:$0xff]  ;;  %v132_v1 = vld [vmem:[%s3113_s26 + $0x10] sm:$0xff]  ;;  %v131_v3 = vld [vmem:[%s3113_s26 + $0x8] sm:$0xff]  ;;  %2348 = vmatpush3.msra.mxu0 %v311_v26  ;;  %s2185_s7 = sshll.u32 %s2674_s25, 4  ;;  %s2186_s7 = int_to_ptr.vmem [resolvable:$true] %s2185_s7 }
  0x48   :  { %2323 = vmatprep.subr.mxu1 %v133_v0  ;;  %v130_v4 = vld [vmem:[%s3113_s26] sm:$0xff]  ;;  %2349 = vmatprep.subr.mxu0 %v310_v27  ;;  %s2632_s26 = scalar_lea.vmem %s2186_s7, 256  ;;  %p2637_p12 = scmp.lt.s32.totalorder %s2186_s7, %s2186_s7 }
  0x49   :  { %2324 = vmatpush3.msra.mxu1 %v133_v0  ;;  %2350 = vmatpush3.msra.mxu0 %v310_v27  ;;  %v407_v29 = vld [vmem:[%s3114_s2] sm:$0xff]  ;;  %v408_v33 = vld [vmem:[%s3114_s2 + $0x8] sm:$0xff]  ;;  %p2633_p11 = scmp.ne.s32.totalorder %s2186_s7, %s2632_s26  ;;  %p2638_p13 = scmp.lt.s32.totalorder %s2632_s26, %s2632_s26 }
  0x4a   :  { %2325 = vmatprep.subr.mxu1 %v132_v1  ;;  %2351 = vmatprep.subr.mxu0 %v309_v28 }
  0x4b   :  { %2326 = vmatpush3.msra.mxu1 %v132_v1  ;;  %2352 = vmatpush3.msra.mxu0 %v309_v28  ;;  %p2639_p0 = por %p2638_p13, %p2637_p12 }
  0x4c   :  { %2327 = vmatprep.subr.mxu1 %v131_v3  ;;  %2354 = vmatmul.mubr.msk.f32.vlgmr.msra.gmra.mxu0 %vm141_vm0, %v2818_v5 }
  0x4d   :  { %2328 = vmatpush3.msra.mxu1 %v131_v3  ;;  %2366 = vmatprep.subr.mxu0 %v2667_v10  ;;  %p2640_p1 = pnand %p2639_p0, %p2633_p11 }
  0x4e   :  { %2329 = vmatprep.subr.mxu1 %v130_v4  ;;  %2368 = vmatprep.mubr.msk.f32.mxu0 %vm2668_vm1, %v2667_v10 }
  0x4f   :  { %2330 = vmatpush3.msra.mxu1 %v130_v4 }
  0x50   :  { %2332 = vmatmul.mubr.msk.f32.vlgmr.msra.gmra.mxu1 %vm141_vm0, %v2818_v5  ;;  %2334 = vmatprep.subr.mxu1 %v226_v6 }
  0x51   :  { %2335 = vmatpush3.msra.mxu1 %v226_v6  ;;  %2342 = vmatprep.mubr.msk.f32.mxu1 %vm141_vm0, %v2806_v2  ;;  %v2214_v6 = vld [vmem:[%s3114_s2 + $0x10] sm:$0xff] }
  0x52   :  { %2336 = vmatprep.subr.mxu1 %v225_v7 }
  0x53   :  { %2337 = vmatpush3.msra.mxu1 %v225_v7 }
  0x54   :  { %2338 = vmatprep.subr.mxu1 %v224_v8 }
  0x55   :  { %2339 = vmatpush3.msra.mxu1 %v224_v8 }
  0x56   :  { %2340 = vmatprep.subr.mxu1 %v223_v9 }
  0x57   :  { %2341 = vmatpush3.msra.mxu1 %v223_v9 }
  0x58   :  { %2343 = vmatmul.mubr.msk.f32.vlgmr.msra.gmra.mxu1 %vm141_vm0, %v2818_v5  ;;  %2356 = vmatprep.subr.mxu1 %v2667_v10 }
  0x59   :  { %2358 = vmatprep.mubr.msk.f32.mxu1 %vm2668_vm1, %v2667_v10 }
 0x10c   :  { %v2355_v40 = vpop.f32.mrf.mxu0 }
 0x10d   :  { %v392_v41 = vadd.f32 %v2355_v40, %v2205_v39 }
 0x10e   :  { %v386_v52 = vpop.f32.mrf.mxu0 }
 0x10f   :  { %400 = vst.msk [vmem:[#allocation4 + $0x8] sm:$0xff] %vm141_vm0, %v392_v41  ;;  %v387_v53 = vadd.f32 %v2205_v39, %v386_v52 }
 0x110   :  { %v2333_v12 = vpop.f32.mrf.mxu1 }
 0x111   :  { %v220_v13 = vadd.f32 %v2333_v12, %v2199_v11  ;;  %399 = vst.msk [vmem:[#allocation4] sm:$0xff] %vm141_vm0, %v387_v53  ;;  %v2223_v53 = vld [vmem:[%s3114_s2 + $0x28] sm:$0xff] }
 0x112   :  { %v214_v14 = vpop.f32.mrf.mxu1 }
 0x113   :  { %396 = vst.msk [vmem:[#allocation2 + $0x8] sm:$0xff] %vm141_vm0, %v220_v13  ;;  %v215_v15 = vadd.f32 %v2199_v11, %v214_v14  ;;  %v2215_v13 = vld [vmem:[%s3114_s2 + $0x18] sm:$0xff] }
 0x115   :  { %395 = vst.msk [vmem:[#allocation2] sm:$0xff] %vm141_vm0, %v215_v15 }
 0x116   :  { %v2887_v54 = vld [vmem:[#allocation4 + $0x8] sm:$0xff] }
 0x118   :  { %v2344_v17 = vpop.f32.mrf.mxu1  ;;  %v2891_v55 = vld [vmem:[#allocation4] sm:$0xff] }
 0x119   :  { %v306_v18 = vadd.f32 %v2344_v17, %v2202_v16  ;;  %2367 = vmatpush3.msra.mxu0 %v2891_v55 }
 0x11a   :  { %v300_v19 = vpop.f32.mrf.mxu1  ;;  %v2859_v24 = vld [vmem:[#allocation2 + $0x8] sm:$0xff]  ;;  %2376 = vmatprep.subr.mxu0 %v2667_v10 }
 0x11b   :  { %398 = vst.msk [vmem:[#allocation3 + $0x8] sm:$0xff] %vm141_vm0, %v306_v18  ;;  %v301_v20 = vadd.f32 %v2202_v16, %v300_v19 }
 0x11c   :  { %v2847_v23 = vld [vmem:[#allocation2] sm:$0xff] }
 0x11d   :  { %397 = vst.msk [vmem:[#allocation3] sm:$0xff] %vm141_vm0, %v301_v20 }
 0x122   :  { %v2839_v21 = vld [vmem:[#allocation3 + $0x8] sm:$0xff] }
 0x123   :  { %825 = vrot.lane.b32.xlu1 %v2839_v21, %s2669_s3 }
 0x124   :  { %v2843_v22 = vld [vmem:[#allocation3] sm:$0xff] }
 0x125   :  { %2357 = vmatpush3.xpose.msk.msra.mxu1 %vm409_vm2, %v2843_v22 }
 0x126   :  { %2361 = vmatprep.subr.mxu1 %v2667_v10 }
 0x127   :  { %742 = vrot.lane.b32.xlu1 %v2847_v23, %s2669_s3 }
 0x128   :  { %2359 = vmatmul.mubr.msk.f32.vlgmr.msra.gmra.mxu1 %vm409_vm2, %v2847_v23 }
 0x129   :  { %2362 = vmatpush3.xpose.msk.msra.mxu1 %vm409_vm2, %v2839_v21  ;;  %2363 = vmatprep.mubr.msk.f32.mxu1 %vm2668_vm1, %v2667_v10 }
 0x12a   :  { %2371 = vmatprep.subr.mxu1 %v2667_v10 }
 0x12c   :  { %2364 = vmatmul.mubr.msk.f32.vlgmr.msra.gmra.mxu1 %vm409_vm2, %v2859_v24 }
 0x12d   :  { %2373 = vmatprep.mubr.msk.f32.mxu1 %vm2668_vm1, %v2667_v10  ;;  %2372 = vmatpush3.msra.mxu1 %v2887_v54 }
 0x12e   :  { %2381 = vmatprep.subr.mxu1 %v2667_v10 }
 0x195   :  { %v826_v56 = vpop.permute.xlu1 %825 }
 0x199   :  { %v743_v57 = vpop.permute.xlu1 %742 }
 0x1e8   :  { %v482_v30 = vpop.f32.mrf.mxu1 }
 0x1e9   :  { %v483_v31 = vadd.f32 %v482_v30, %v407_v29 }
 0x1ea   :  { %v2360_v32 = vpop.f32.mrf.mxu1 }
 0x1eb   :  { %v562_v34 = vsel %vm409_vm2, %v483_v31, -inf }
 0x1ec   :  { %563 = vmax.xlane.f32.xlu0 %v562_v34  ;;  %v558_v35 = vpop.f32.mrf.mxu1 }
 0x1ed   :  { %v559_v36 = vadd.f32 %v558_v35, %v408_v33 }
 0x1ee   :  { %v2365_v37 = vpop.f32.mrf.mxu1 }
 0x1ef   :  { %v565_v38 = vsel %vm409_vm2, %v559_v36, -inf }
 0x1f0   :  { %566 = vmax.xlane.f32.xlu0 %v565_v38 }
 0x206   :  { %745 = vrot.lane.b32.xlu0 %v2843_v22, %s2669_s3 }
 0x275   :  { %v564_v42 = vpop.xlane.xlu0 %563 }
 0x276   :  { %v568_v43 = vsub.f32 %v483_v31, %v564_v42 }
 0x278   :  { %v570_v44 = vmul.f32 1.442695, %v568_v43 }
 0x279   :  { %v567_v45 = vpop.xlane.xlu0 %566 }
 0x27a   :  { %2492 = vpow2.f32 %v570_v44  ;;  %v569_v46 = vsub.f32 %v559_v36, %v567_v45 }
 0x27c   :  { %v572_v47 = vmul.f32 1.442695, %v569_v46 }
 0x27d   :  { %v746_v62 = vpop.permute.xlu0 %745 }
 0x27e   :  { %2494 = vpow2.f32 %v572_v47  ;;  %v2222_v47 = vld [vmem:[%s3114_s2 + $0x20] sm:$0xff] }
 0x287   :  { %v2493_v48 = vpop.eup %2492 }
 0x288   :  { %v574_v49 = vsel %vm409_vm2, %v2493_v48, 0.0 }
 0x289   :  { %575 = vadd.xlane.f32.xlu1 %v574_v49 }
 0x28b   :  { %v2495_v50 = vpop.eup %2494 }
 0x28c   :  { %v577_v51 = vsel %vm409_vm2, %v2495_v50, 0.0 }
 0x28d   :  { %578 = vadd.xlane.f32.xlu1 %v577_v51 }
 0x29e   :  { %822 = vrot.lane.b32.xlu1 %v2859_v24, %s2669_s3 }
 0x312   :  { %v576_v58 = vpop.xlane.xlu1 %575 }
 0x313   :  { %2496 = vrcp.f32 %v576_v58 }
 0x316   :  { %v579_v59 = vpop.xlane.xlu1 %578 }
 0x317   :  { %2498 = vrcp.f32 %v579_v59 }
 0x31a   :  { %v823_v1 = vpop.permute.xlu1 %822 }
 0x320   :  { %v2497_v60 = vpop.eup %2496 }
 0x321   :  { %v582_v61 = vmul.f32 %v2497_v60, %v2493_v48 }
 0x323   :  { %2369 = vmatmul.mubr.msk.f32.vlgmr.msra.gmra.mxu0 %vm409_vm2, %v582_v61 }
 0x324   :  { %v2499_v63 = vpop.eup %2498  ;;  %2377 = vmatpush3.xpose.msk.msra.mxu0 %vm409_vm2, %v746_v62  ;;  %2378 = vmatprep.mubr.msk.f32.mxu0 %vm2668_vm1, %v2667_v10 }
 0x325   :  { %v583_v0 = vmul.f32 %v2499_v63, %v2495_v50  ;;  %2386 = vmatprep.subr.mxu0 %v2667_v10 }
 0x327   :  { %2374 = vmatmul.mubr.msk.f32.vlgmr.msra.gmra.mxu1 %vm409_vm2, %v583_v0  ;;  %2379 = vmatmul.mubr.msk.f32.vlgmr.msra.gmra.mxu0 %vm409_vm2, %v743_v57 }
 0x328   :  { %2382 = vmatpush3.xpose.msk.msra.mxu1 %vm409_vm2, %v826_v56  ;;  %2383 = vmatprep.mubr.msk.f32.mxu1 %vm2668_vm1, %v2667_v10 }
 0x329   :  { %2391 = vmatprep.subr.mxu1 %v2667_v10  ;;  %2388 = vmatprep.mubr.msk.f32.mxu0 %vm2668_vm1, %v2667_v10 }
 0x32b   :  { %2384 = vmatmul.mubr.msk.f32.vlgmr.msra.gmra.mxu1 %vm409_vm2, %v823_v1 }
 0x32c   :  { %2393 = vmatprep.mubr.msk.f32.mxu1 %vm2668_vm1, %v2667_v10 }
 0x3e3   :  { %v653_v3 = vpop.f32.mrf.mxu0 }
 0x3e4   :  { %730 = vst.msk [vmem:[#allocation5] sm:$0xff] %vm409_vm2, %v653_v3 }
 0x3e5   :  { %v2370_v4 = vpop.f32.mrf.mxu0 }
 0x3e7   :  { %v726_v7 = vpop.f32.mrf.mxu1  ;;  %v817_v8 = vpop.f32.mrf.mxu0 }
 0x3e8   :  { %731 = vst.msk [vmem:[#allocation5 + $0x8] sm:$0xff] %vm409_vm2, %v726_v7  ;;  %v818_v9 = vadd.f32 %v2214_v6, %v817_v8 }
 0x3e9   :  { %v2375_v11 = vpop.f32.mrf.mxu1  ;;  %v2380_v12 = vpop.f32.mrf.mxu0 }
 0x3ea   :  { %v901_v14 = vsel %vm409_vm2, %v818_v9, -inf }
 0x3eb   :  { %902 = vmax.xlane.f32.xlu0 %v901_v14  ;;  %v897_v15 = vpop.f32.mrf.mxu1 }
 0x3ec   :  { %v898_v16 = vadd.f32 %v2215_v13, %v897_v15 }
 0x3ed   :  { %v2385_v17 = vpop.f32.mrf.mxu1 }
 0x3ee   :  { %v904_v18 = vsel %vm409_vm2, %v898_v16, -inf }
 0x3ef   :  { %905 = vmax.xlane.f32.xlu1 %v904_v18 }
 0x400   :  { %1001 = vrot.lane.b32.xlu1 %v2887_v54, %s2669_s3 }
 0x401   :  { %924 = vrot.lane.b32.xlu0 %v2891_v55, %s2669_s3 }
 0x404   :  { %1101 = vrot.lane.b32.xlu1 %v2843_v22, %s2670_s12 }
 0x408   :  { %1181 = vrot.lane.b32.xlu1 %v2839_v21, %s2670_s12 }
 0x40c   :  { %1178 = vrot.lane.b32.xlu1 %v2859_v24, %s2670_s12 }
 0x474   :  { %v903_v19 = vpop.xlane.xlu0 %902 }
 0x475   :  { %v907_v20 = vsub.f32 %v818_v9, %v903_v19 }
 0x477   :  { %v909_v25 = vmul.f32 1.442695, %v907_v20  ;;  %v2230_v20 = vld [vmem:[%s3114_s2 + $0x30] sm:$0xff] }
 0x478   :  { %v925_v26 = vpop.permute.xlu0 %924  ;;  %v906_v27 = vpop.xlane.xlu1 %905 }
 0x479   :  { %2500 = vpow2.f32 %v909_v25  ;;  %v908_v28 = vsub.f32 %v898_v16, %v906_v27  ;;  %2387 = vmatpush3.msra.mxu0 %v925_v26 }
 0x47a   :  { %2396 = vmatprep.subr.mxu0 %v2667_v10 }
 0x47b   :  { %v911_v29 = vmul.f32 1.442695, %v908_v28 }
 0x47c   :  { %v1002_v30 = vpop.permute.xlu1 %1001 }
 0x47d   :  { %2502 = vpow2.f32 %v911_v29  ;;  %2392 = vmatpush3.msra.mxu1 %v1002_v30  ;;  %v2231_v30 = vld [vmem:[%s3114_s2 + $0x38] sm:$0xff]  ;;  %s2673_s2 = smov 24  }
 0x47e   :  { %2401 = vmatprep.subr.mxu1 %v2667_v10 }
 0x480   :  { %v1102_v37 = vpop.permute.xlu1 %1101 }
 0x484   :  { %v1182_v41 = vpop.permute.xlu1 %1181 }
 0x486   :  { %v2501_v31 = vpop.eup %2500 }
 0x487   :  { %v913_v32 = vsel %vm409_vm2, %v2501_v31, 0.0 }
 0x488   :  { %914 = vadd.xlane.f32.xlu0 %v913_v32  ;;  %v1179_v44 = vpop.permute.xlu1 %1178 }
 0x48a   :  { %v2503_v33 = vpop.eup %2502 }
 0x48b   :  { %v916_v34 = vsel %vm409_vm2, %v2503_v33, 0.0 }
 0x48c   :  { %917 = vadd.xlane.f32.xlu0 %v916_v34 }
 0x4a2   :  { %1098 = vrot.lane.b32.xlu0 %v2847_v23, %s2670_s12 }
 0x511   :  { %v915_v35 = vpop.xlane.xlu0 %914 }
 0x512   :  { %2504 = vrcp.f32 %v915_v35 }
 0x515   :  { %v918_v36 = vpop.xlane.xlu0 %917 }
 0x516   :  { %2506 = vrcp.f32 %v918_v36 }
 0x519   :  { %v1099_v43 = vpop.permute.xlu0 %1098 }
 0x51f   :  { %v2505_v38 = vpop.eup %2504 }
 0x520   :  { %v921_v39 = vmul.f32 %v2505_v38, %v2501_v31 }
 0x522   :  { %2389 = vmatmul.mubr.msk.f32.vlgmr.msra.gmra.mxu0 %vm409_vm2, %v921_v39 }
 0x523   :  { %v2507_v40 = vpop.eup %2506  ;;  %2397 = vmatpush3.xpose.msk.msra.mxu0 %vm409_vm2, %v1102_v37  ;;  %2398 = vmatprep.mubr.msk.f32.mxu0 %vm2668_vm1, %v2667_v10 }
 0x524   :  { %v922_v42 = vmul.f32 %v2507_v40, %v2503_v33  ;;  %2406 = vmatprep.subr.mxu0 %v2667_v10 }
 0x526   :  { %2394 = vmatmul.mubr.msk.f32.vlgmr.msra.gmra.mxu1 %vm409_vm2, %v922_v42  ;;  %2399 = vmatmul.mubr.msk.f32.vlgmr.msra.gmra.mxu0 %vm409_vm2, %v1099_v43 }
 0x527   :  { %2402 = vmatpush3.xpose.msk.msra.mxu1 %vm409_vm2, %v1182_v41  ;;  %2403 = vmatprep.mubr.msk.f32.mxu1 %vm2668_vm1, %v2667_v10 }
 0x528   :  { %2411 = vmatprep.subr.mxu1 %v2667_v10  ;;  %2408 = vmatprep.mubr.msk.f32.mxu0 %vm2668_vm1, %v2667_v10 }
 0x52a   :  { %2404 = vmatmul.mubr.msk.f32.vlgmr.msra.gmra.mxu1 %vm409_vm2, %v1179_v44 }
 0x52b   :  { %2413 = vmatprep.mubr.msk.f32.mxu1 %vm2668_vm1, %v2667_v10 }
 0x5e2   :  { %v2955_v45 = vpop.f32.mrf.mxu0 }
 0x5e4   :  { %v2390_v46 = vpop.f32.mrf.mxu0 }
 0x5e6   :  { %v2960_v48 = vpop.f32.mrf.mxu1  ;;  %v1173_v49 = vpop.f32.mrf.mxu0 }
 0x5e7   :  { %v1174_v50 = vadd.f32 %v2222_v47, %v1173_v49 }
 0x5e8   :  { %v2395_v51 = vpop.f32.mrf.mxu1  ;;  %v2400_v52 = vpop.f32.mrf.mxu0 }
 0x5e9   :  { %v1257_v56 = vsel %vm409_vm2, %v1174_v50, -inf }
 0x5ea   :  { %1258 = vmax.xlane.f32.xlu0 %v1257_v56  ;;  %v1253_v57 = vpop.f32.mrf.mxu1 }
 0x5eb   :  { %v1254_v58 = vadd.f32 %v2223_v53, %v1253_v57 }
 0x5ec   :  { %v2405_v59 = vpop.f32.mrf.mxu1 }
 0x5ed   :  { %v1260_v60 = vsel %vm409_vm2, %v1254_v58, -inf  ;;  %v1803_v59 = vld [vmem:[#allocation12 + $0x8] sm:$0xff] }
 0x5ee   :  { %1261 = vmax.xlane.f32.xlu1 %v1260_v60  ;;  %v1802_v60 = vld [vmem:[#allocation12] sm:$0xff] }
 0x5ff   :  { %1357 = vrot.lane.b32.xlu1 %v2887_v54, %s2670_s12 }
 0x600   :  { %1280 = vrot.lane.b32.xlu0 %v2891_v55, %s2670_s12 }
 0x603   :  { %1457 = vrot.lane.b32.xlu1 %v2843_v22, %s2671_s30 }
 0x607   :  { %1537 = vrot.lane.b32.xlu1 %v2839_v21, %s2671_s30 }
 0x60b   :  { %1534 = vrot.lane.b32.xlu1 %v2859_v24, %s2671_s30 }
 0x673   :  { %v1259_v61 = vpop.xlane.xlu0 %1258 }
 0x674   :  { %v1263_v62 = vsub.f32 %v1174_v50, %v1259_v61 }
 0x676   :  { %v1265_v63 = vmul.f32 1.442695, %v1263_v62 }
 0x677   :  { %v1281_v0 = vpop.permute.xlu0 %1280  ;;  %v1262_v1 = vpop.xlane.xlu1 %1261 }
 0x678   :  { %2508 = vpow2.f32 %v1265_v63  ;;  %v1264_v3 = vsub.f32 %v1254_v58, %v1262_v1  ;;  %2407 = vmatpush3.msra.mxu0 %v1281_v0  ;;  %v1805_v58 = vld [vmem:[#allocation12 + $0x18] sm:$0xff] }
 0x679   :  { %2416 = vmatprep.subr.mxu0 %v2667_v10 }
 0x67a   :  { %v1267_v4 = vmul.f32 1.442695, %v1264_v3 }
 0x67b   :  { %v1358_v6 = vpop.permute.xlu1 %1357 }
 0x67c   :  { %2510 = vpow2.f32 %v1267_v4  ;;  %2412 = vmatpush3.msra.mxu1 %v1358_v6 }
 0x67d   :  { %2421 = vmatprep.subr.mxu1 %v2667_v10 }
 0x67f   :  { %v1458_v11 = vpop.permute.xlu1 %1457 }
 0x683   :  { %v1538_v15 = vpop.permute.xlu1 %1537 }
 0x685   :  { %v2509_v21 = vpop.eup %2508 }
 0x686   :  { %v1269_v22 = vsel %vm409_vm2, %v2509_v21, 0.0 }
 0x687   :  { %1270 = vadd.xlane.f32.xlu0 %v1269_v22  ;;  %v1535_v17 = vpop.permute.xlu1 %1534 }
 0x689   :  { %v2511_v24 = vpop.eup %2510 }
 0x68a   :  { %v1272_v7 = vsel %vm409_vm2, %v2511_v24, 0.0 }
 0x68b   :  { %1273 = vadd.xlane.f32.xlu0 %v1272_v7 }
 0x6a1   :  { %1454 = vrot.lane.b32.xlu0 %v2847_v23, %s2671_s30 }
 0x710   :  { %v1271_v8 = vpop.xlane.xlu0 %1270 }
 0x711   :  { %2512 = vrcp.f32 %v1271_v8 }
 0x714   :  { %v1274_v9 = vpop.xlane.xlu0 %1273 }
 0x715   :  { %2514 = vrcp.f32 %v1274_v9 }
 0x718   :  { %v1455_v23 = vpop.permute.xlu0 %1454 }
 0x71e   :  { %v2513_v12 = vpop.eup %2512 }
 0x71f   :  { %v1277_v13 = vmul.f32 %v2513_v12, %v2509_v21  ;;  %v2238_v21 = vld [vmem:[%s3097_s9] ss:$0 sm:$0xff] }
 0x721   :  { %2409 = vmatmul.mubr.msk.f32.vlgmr.msra.gmra.mxu0 %vm409_vm2, %v1277_v13 }
 0x722   :  { %v2515_v14 = vpop.eup %2514  ;;  %2417 = vmatpush3.xpose.msk.msra.mxu0 %vm409_vm2, %v1458_v11  ;;  %2418 = vmatprep.mubr.msk.f32.mxu0 %vm2668_vm1, %v2667_v10 }
 0x723   :  { %v1278_v16 = vmul.f32 %v2515_v14, %v2511_v24  ;;  %2426 = vmatprep.subr.mxu0 %v2667_v10 }
 0x725   :  { %2414 = vmatmul.mubr.msk.f32.vlgmr.msra.gmra.mxu1 %vm409_vm2, %v1278_v16  ;;  %2419 = vmatmul.mubr.msk.f32.vlgmr.msra.gmra.mxu0 %vm409_vm2, %v1455_v23 }
 0x726   :  { %2422 = vmatpush3.xpose.msk.msra.mxu1 %vm409_vm2, %v1538_v15  ;;  %2423 = vmatprep.mubr.msk.f32.mxu1 %vm2668_vm1, %v2667_v10 }
 0x727   :  { %2431 = vmatprep.subr.mxu1 %v2667_v10  ;;  %2428 = vmatprep.mubr.msk.f32.mxu0 %vm2668_vm1, %v2667_v10 }
 0x729   :  { %2424 = vmatmul.mubr.msk.f32.vlgmr.msra.gmra.mxu1 %vm409_vm2, %v1535_v17 }
 0x72a   :  { %2433 = vmatprep.mubr.msk.f32.mxu1 %vm2668_vm1, %v2667_v10 }
 0x7e1   :  { %v1352_v18 = vpop.f32.mrf.mxu0 }
 0x7e3   :  { %v2410_v19 = vpop.f32.mrf.mxu0 }
 0x7e5   :  { %v1429_v25 = vpop.f32.mrf.mxu1  ;;  %v1529_v26 = vpop.f32.mrf.mxu0 }
 0x7e6   :  { %v1530_v27 = vadd.f32 %v2230_v20, %v1529_v26  ;;  %v1944_v26 = vld [vmem:[#allocation14 + $0x18] sm:$0xff] }
 0x7e7   :  { %v2415_v28 = vpop.f32.mrf.mxu1  ;;  %v2420_v29 = vpop.f32.mrf.mxu0 }
 0x7e8   :  { %v1613_v31 = vsel %vm409_vm2, %v1530_v27, -inf  ;;  %v1941_v28 = vld [vmem:[#allocation14] sm:$0xff]  ;;  %v2042_v29 = vld [vmem:[%s3102_s14 + $0x38] sm:$0xff] }
 0x7e9   :  { %1614 = vmax.xlane.f32.xlu0 %v1613_v31  ;;  %v1609_v32 = vpop.f32.mrf.mxu1  ;;  %v2040_v31 = vld [vmem:[%s3102_s14 + $0x28] sm:$0xff] }
 0x7ea   :  { %v1610_v10 = vadd.f32 %v2231_v30, %v1609_v32  ;;  %v2041_v30 = vld [vmem:[%s3102_s14 + $0x30] sm:$0xff]  ;;  %v2039_v32 = vld [vmem:[%s3102_s14 + $0x20] sm:$0xff] }
 0x7eb   :  { %v2425_v33 = vpop.f32.mrf.mxu1 }
 0x7ec   :  { %v1616_v34 = vsel %vm409_vm2, %v1610_v10, -inf }
 0x7ed   :  { %1617 = vmax.xlane.f32.xlu1 %v1616_v34 }
 0x7fe   :  { %1713 = vrot.lane.b32.xlu1 %v2887_v54, %s2671_s30 }
 0x802   :  { %1079 = vrot.lane.b32.xlu1 %v2955_v45, %s2663_s1 }
 0x806   :  { %1081 = vrot.lane.b32.xlu1 %v2960_v48, %s2663_s1 }
 0x80a   :  { %1437 = vrot.lane.b32.xlu1 %v1429_v25, %s2672_s22 }
 0x872   :  { %v1615_v35 = vpop.xlane.xlu0 %1614 }
 0x873   :  { %v1619_v36 = vsub.f32 %v1530_v27, %v1615_v35  ;;  %v1942_v27 = vld [vmem:[#allocation14 + $0x8] sm:$0xff] }
 0x875   :  { %v1621_v37 = vmul.f32 1.442695, %v1619_v36 }
 0x876   :  { %v1618_v38 = vpop.xlane.xlu1 %1617 }
 0x877   :  { %2516 = vpow2.f32 %v1621_v37  ;;  %v1620_v39 = vsub.f32 %v1610_v10, %v1618_v38 }
 0x879   :  { %v1623_v40 = vmul.f32 1.442695, %v1620_v39  ;;  %v2241_v39 = vld [vmem:[%s3098_s10] ss:$0 sm:$0xff] }
 0x87a   :  { %v1714_v41 = vpop.permute.xlu1 %1713 }
 0x87b   :  { %2518 = vpow2.f32 %v1623_v40  ;;  %2432 = vmatpush3.msra.mxu1 %v1714_v41  ;;  %v2242_v41 = vld [vmem:[%s3099_s11] ss:$0 sm:$0xff] }
 0x87c   :  { %2447 = vmatprep.subr.mxu1 %v1944_v26 }
 0x87e   :  { %v1080_v54 = vpop.permute.xlu1 %1079 }
 0x87f   :  { %1086 = vst.msk [vmem:[#allocation5] sm:$0xff] %vm1085_vm3, %v1080_v54 }
 0x882   :  { %v1082_v42 = vpop.permute.xlu1 %1081 }
 0x883   :  { %1087 = vst.msk [vmem:[#allocation5 + $0x8] sm:$0xff] %vm1085_vm3, %v1082_v42 }
 0x884   :  { %v2517_v43 = vpop.eup %2516 }
 0x885   :  { %v1625_v44 = vsel %vm409_vm2, %v2517_v43, 0.0 }
 0x886   :  { %1626 = vadd.xlane.f32.xlu0 %v1625_v44  ;;  %v1438_v45 = vpop.permute.xlu1 %1437 }
 0x887   :  { %1443 = vst.msk [vmem:[#allocation5 + $0x8] sm:$0xff] %vm1441_vm4, %v1438_v45 }
 0x888   :  { %v2519_v46 = vpop.eup %2518 }
 0x889   :  { %v1628_v47 = vsel %vm409_vm2, %v2519_v46, 0.0 }
 0x88a   :  { %1629 = vadd.xlane.f32.xlu0 %v1628_v47  ;;  %v2038_v47 = vld [vmem:[%s3102_s14 + $0x18] sm:$0xff] }
 0x8a0   :  { %1636 = vrot.lane.b32.xlu0 %v2891_v55, %s2671_s30  ;;  %v1804_v55 = vld [vmem:[#allocation12 + $0x10] sm:$0xff] }
 0x8a4   :  { %1435 = vrot.lane.b32.xlu0 %v1352_v18, %s2672_s22 }
 0x90f   :  { %v1627_v48 = vpop.xlane.xlu0 %1626 }
 0x910   :  { %2520 = vrcp.f32 %v1627_v48  ;;  %v2037_v48 = vld [vmem:[%s3102_s14 + $0x10] sm:$0xff] }
 0x913   :  { %v1630_v49 = vpop.xlane.xlu0 %1629 }
 0x914   :  { %2522 = vrcp.f32 %v1630_v49  ;;  %v2036_v49 = vld [vmem:[%s3102_s14 + $0x8] sm:$0xff] }
 0x917   :  { %v1637_v50 = vpop.permute.xlu0 %1636 }
 0x918   :  { %2427 = vmatpush3.msra.mxu0 %v1637_v50  ;;  %v2035_v50 = vld [vmem:[%s3102_s14] sm:$0xff] }
 0x919   :  { %2436 = vmatprep.subr.mxu0 %v1805_v58 }
 0x91b   :  { %v1436_v51 = vpop.permute.xlu0 %1435 }
 0x91c   :  { %1442 = vst.msk [vmem:[#allocation5] sm:$0xff] %vm1441_vm4, %v1436_v51  ;;  %v2243_v51 = vld [vmem:[%s3101_s13] ss:$0 sm:$0xff] }
 0x91d   :  { %v2521_v52 = vpop.eup %2520 }
 0x91e   :  { %v1633_v53 = vmul.f32 %v2521_v52, %v2517_v43 }
 0x920   :  { %2429 = vmatmul.mubr.msk.f32.vlgmr.msra.gmra.mxu0 %vm409_vm2, %v1633_v53 }
 0x921   :  { %v2523_v56 = vpop.eup %2522  ;;  %2437 = vmatpush3.msra.mxu0 %v1805_v58 }
 0x922   :  { %v1634_v57 = vmul.f32 %v2523_v56, %v2519_v46  ;;  %2438 = vmatprep.subr.mxu0 %v1804_v55 }
 0x923   :  { %2439 = vmatpush3.msra.mxu0 %v1804_v55 }
 0x924   :  { %2434 = vmatmul.mubr.msk.f32.vlgmr.msra.gmra.mxu1 %vm409_vm2, %v1634_v57  ;;  %2440 = vmatprep.subr.mxu0 %v1803_v59 }
 0x925   :  { %2441 = vmatpush3.msra.mxu0 %v1803_v59  ;;  %2448 = vmatpush3.msra.mxu1 %v1944_v26  ;;  %v2246_v59 = vld [vmem:[%s3103_s15] ss:$0 sm:$0xff] }
 0x926   :  { %2442 = vmatprep.subr.mxu0 %v1802_v60  ;;  %v2250_v26 = vld [vmem:[%s3105_s17] ss:$0 sm:$0xff] }
 0x927   :  { %2443 = vmatpush3.msra.mxu0 %v1802_v60 }
 0x928   :  { %2458 = vmatprep.subr.mxu0 %v2042_v29 }
 0x9e0   :  { %v1708_v61 = vpop.f32.mrf.mxu0 }
 0x9e1   :  { %1791 = vrot.lane.b32.xlu0 %v1708_v61, %s2673_s2 }
 0x9e2   :  { %v2430_v62 = vpop.f32.mrf.mxu0 }
 0x9e4   :  { %v1785_v63 = vpop.f32.mrf.mxu1 }
 0x9e5   :  { %1793 = vrot.lane.b32.xlu1 %v1785_v63, %s2673_s2 }
 0x9e6   :  { %v2435_v0 = vpop.f32.mrf.mxu1 }
 0xa53   :  { %v1792_v1 = vpop.permute.xlu0 %1791 }
 0xa54   :  { %1798 = vst.msk [vmem:[#allocation5] sm:$0xff] %vm1797_vm5, %v1792_v1 }
 0xa57   :  { %v1794_v3 = vpop.permute.xlu1 %1793 }
 0xa58   :  { %1799 = vst.msk [vmem:[#allocation5 + $0x8] sm:$0xff] %vm1797_vm5, %v1794_v3 }
 0xa5b   :  { %v1800_v4 = vld [vmem:[#allocation5] sm:$0xff] }
 0xa5c   :  { %2444 = vmatprep.mubr.msk.f32.mxu0 %vm141_vm0, %v1800_v4 }
 0xa5f   :  { %v1801_v6 = vld [vmem:[#allocation5 + $0x8] sm:$0xff] }
 0xa60   :  { %2445 = vmatmul.mubr.msk.f32.vlgmr.msra.gmra.mxu0 %vm141_vm0, %v1801_v6 }
 0xa61   :  { %2459 = vmatpush3.msra.mxu0 %v2042_v29 }
 0xa62   :  { %2460 = vmatprep.subr.mxu0 %v2041_v30 }
 0xa63   :  { %2461 = vmatpush3.msra.mxu0 %v2041_v30 }
 0xa64   :  { %2462 = vmatprep.subr.mxu0 %v2040_v31 }
 0xa65   :  { %2463 = vmatpush3.msra.mxu0 %v2040_v31 }
 0xa66   :  { %2464 = vmatprep.subr.mxu0 %v2039_v32 }
 0xa67   :  { %2465 = vmatpush3.msra.mxu0 %v2039_v32 }
 0xa68   :  { %2466 = vmatprep.subr.mxu0 %v2038_v47 }
 0xa69   :  { %2467 = vmatpush3.msra.mxu0 %v2038_v47 }
 0xa6a   :  { %2468 = vmatprep.subr.mxu0 %v2037_v48 }
 0xa6b   :  { %2469 = vmatpush3.msra.mxu0 %v2037_v48 }
 0xa6c   :  { %2470 = vmatprep.subr.mxu0 %v2036_v49 }
 0xa6d   :  { %2471 = vmatpush3.msra.mxu0 %v2036_v49 }
 0xa6e   :  { %2472 = vmatprep.subr.mxu0 %v2035_v50 }
 0xa6f   :  { %2473 = vmatpush3.msra.mxu0 %v2035_v50 }
 0xb20   :  { %v2446_v22 = vpop.f32.mrf.mxu0 }
 0xb21   :  { %v1891_v24 = vadd.f32 %v2446_v22, %v2238_v21 }
 0xb22   :  { %v1885_v7 = vpop.f32.mrf.mxu0 }
 0xb23   :  { %v1886_v8 = vadd.f32 %v2238_v21, %v1885_v7  ;;  %v1895_v9 = vadd.f32 %v1891_v24, %v2818_v5 }
 0xb25   :  { %v1899_v11 = vsel %vm141_vm0, %v1895_v9, 0.0  ;;  %v1894_v12 = vadd.f32 %v1886_v8, %v2806_v2  ;;  %v1943_v2 = vld [vmem:[#allocation14 + $0x10] sm:$0xff] }
 0xb26   :  { %1900 = vadd.xlane.f32.xlu1 %v1899_v11  ;;  %2449 = vmatprep.subr.mxu1 %v1943_v2 }
 0xb27   :  { %v1896_v13 = vsel %vm141_vm0, %v1894_v12, 0.0  ;;  %2450 = vmatpush3.msra.mxu1 %v1943_v2 }
 0xb28   :  { %1897 = vadd.xlane.f32.xlu0 %v1896_v13  ;;  %2451 = vmatprep.subr.mxu1 %v1942_v27 }
 0xb29   :  { %2452 = vmatpush3.msra.mxu1 %v1942_v27 }
 0xb2a   :  { %2453 = vmatprep.subr.mxu1 %v1941_v28 }
 0xb2b   :  { %2454 = vmatpush3.msra.mxu1 %v1941_v28 }
 0xbaf   :  { %v1901_v14 = vpop.xlane.xlu1 %1900 }
 0xbb0   :  { %v1904_v15 = vmul.f32 0.03125, %v1901_v14 }
 0xbb1   :  { %v1898_v16 = vpop.xlane.xlu0 %1897 }
 0xbb2   :  { %v1903_v23 = vmul.f32 0.03125, %v1898_v16  ;;  %v1906_v17 = vsub.f32 %v1895_v9, %v1904_v15 }
 0xbb4   :  { %v1905_v18 = vsub.f32 %v1894_v12, %v1903_v23  ;;  %v1908_v25 = vmul.f32 %v1906_v17, %v1906_v17 }
 0xbb6   :  { %v1907_v19 = vmul.f32 %v1905_v18, %v1905_v18  ;;  %v1912_v5 = vsel %vm141_vm0, %v1908_v25, 0.0 }
 0xbb8   :  { %v1909_v20 = vsel %vm141_vm0, %v1907_v19, 0.0 }
 0xbb9   :  { %1910 = vadd.xlane.f32.xlu0 %v1909_v20  ;;  %v2249_v20 = vld [vmem:[%s3104_s16] ss:$0 sm:$0xff] }
 0xbbd   :  { %1913 = vadd.xlane.f32.xlu0 %v1912_v5 }
 0xc42   :  { %v1911_v10 = vpop.xlane.xlu0 %1910 }
 0xc43   :  { %v1915_v33 = vmul.f32 0.03125, %v1911_v10 }
 0xc45   :  { %v1917_v34 = vadd.f32 1e-05, %v1915_v33 }
 0xc46   :  { %v1914_v35 = vpop.xlane.xlu0 %1913 }
 0xc47   :  { %2524 = vrsqrt.f32 %v1917_v34  ;;  %v1916_v36 = vmul.f32 0.03125, %v1914_v35 }
 0xc49   :  { %v1918_v37 = vadd.f32 1e-05, %v1916_v36 }
 0xc4b   :  { %2526 = vrsqrt.f32 %v1918_v37 }
 0xc54   :  { %v2525_v38 = vpop.eup %2524 }
 0xc55   :  { %v1921_v40 = vmul.f32 %v2525_v38, %v1905_v18 }
 0xc57   :  { %v1930_v54 = vmul.f32 %v2241_v39, %v1921_v40 }
 0xc58   :  { %v2527_v42 = vpop.eup %2526 }
 0xc59   :  { %v1922_v43 = vmul.f32 %v2527_v42, %v1906_v17  ;;  %v1939_v44 = vadd.f32 %v2242_v41, %v1930_v54 }
 0xc5b   :  { %v1931_v45 = vmul.f32 %v2241_v39, %v1922_v43  ;;  %2455 = vmatprep.mubr.msk.f32.mxu1 %vm141_vm0, %v1939_v44 }
 0xc5d   :  { %v1940_v46 = vadd.f32 %v2242_v41, %v1931_v45 }
 0xc5f   :  { %2456 = vmatmul.mubr.msk.f32.vlgmr.msra.gmra.mxu1 %vm141_vm0, %v1940_v46 }
 0xd1f   :  { %v2457_v52 = vpop.f32.mrf.mxu1 }
 0xd20   :  { %v2030_v53 = vadd.f32 %v2457_v52, %v2243_v51 }
 0xd21   :  { %v2024_v56 = vpop.f32.mrf.mxu1 }
 0xd22   :  { %v2025_v57 = vadd.f32 %v2243_v51, %v2024_v56  ;;  %v2034_v55 = vmax.f32 %v2030_v53, 0.0 }
 0xd24   :  { %v2033_v58 = vmax.f32 %v2025_v57, 0.0 }
 0xd26   :  { %2474 = vmatprep.mubr.msk.f32.mxu0 %vm2050_vm6, %v2033_v58 }
 0xd27   :  { %2475 = vmatmul.mubr.msk.f32.vlgmr.msra.gmra.mxu0 %vm2050_vm6, %v2034_v55 }
 0xde7   :  { %v2476_v60 = vpop.f32.mrf.mxu0 }
 0xde8   :  { %v2129_v61 = vadd.f32 %v2476_v60, %v2246_v59 }
 0xde9   :  { %v2123_v62 = vpop.f32.mrf.mxu0 }
 0xdea   :  { %v2124_v63 = vadd.f32 %v2246_v59, %v2123_v62  ;;  %v2133_v0 = vadd.f32 %v2129_v61, %v1940_v46 }
 0xdec   :  { %v2137_v1 = vsel %vm141_vm0, %v2133_v0, 0.0  ;;  %v2132_v3 = vadd.f32 %v2124_v63, %v1939_v44 }
 0xded   :  { %2138 = vadd.xlane.f32.xlu1 %v2137_v1 }
 0xdee   :  { %v2134_v4 = vsel %vm141_vm0, %v2132_v3, 0.0 }
 0xdef   :  { %2135 = vadd.xlane.f32.xlu0 %v2134_v4 }
 0xe76   :  { %v2139_v6 = vpop.xlane.xlu1 %2138 }
 0xe77   :  { %v2141_v21 = vmul.f32 0.03125, %v2139_v6 }
 0xe78   :  { %v2136_v22 = vpop.xlane.xlu0 %2135 }
 0xe79   :  { %v2143_v24 = vsub.f32 %v2133_v0, %v2141_v21  ;;  %v2140_v7 = vmul.f32 0.03125, %v2136_v22 }
 0xe7b   :  { %v2142_v8 = vsub.f32 %v2132_v3, %v2140_v7  ;;  %v2145_v9 = vmul.f32 %v2143_v24, %v2143_v24 }
 0xe7d   :  { %v2149_v11 = vsel %vm141_vm0, %v2145_v9, 0.0  ;;  %v2144_v12 = vmul.f32 %v2142_v8, %v2142_v8 }
 0xe7e   :  { %2150 = vadd.xlane.f32.xlu1 %v2149_v11 }
 0xe7f   :  { %v2146_v13 = vsel %vm141_vm0, %v2144_v12, 0.0 }
 0xe80   :  { %2147 = vadd.xlane.f32.xlu0 %v2146_v13 }
 0xf07   :  { %v2151_v14 = vpop.xlane.xlu1 %2150 }
 0xf08   :  { %v2153_v15 = vmul.f32 0.03125, %v2151_v14 }
 0xf09   :  { %v2148_v16 = vpop.xlane.xlu0 %2147 }
 0xf0a   :  { %v2155_v23 = vadd.f32 1e-05, %v2153_v15  ;;  %v2152_v17 = vmul.f32 0.03125, %v2148_v16 }
 0xf0c   :  { %2528 = vrsqrt.f32 %v2155_v23  ;;  %v2154_v18 = vadd.f32 1e-05, %v2152_v17 }
 0xf0e   :  { %2530 = vrsqrt.f32 %v2154_v18 }
 0xf19   :  { %v2529_v19 = vpop.eup %2528 }
 0xf1a   :  { %v2159_v25 = vmul.f32 %v2529_v19, %v2143_v24 }
 0xf1b   :  { %v2531_v5 = vpop.eup %2530 }
 0xf1c   :  { %v2158_v2 = vmul.f32 %v2531_v5, %v2142_v8  ;;  %v2168_v27 = vmul.f32 %v2249_v20, %v2159_v25 }
 0xf1e   :  { %v2167_v28 = vmul.f32 %v2249_v20, %v2158_v2  ;;  %v2177_v29 = vadd.f32 %v2250_v26, %v2168_v27 }
 0xf20   :  { %v2176_v30 = vadd.f32 %v2250_v26, %v2167_v28  ;;  %2179 = vst.msk [vmem:[#allocation15 + $0x8] sm:$0xff] %vm141_vm0, %v2177_v29 }
 0xf22   :  { %2178 = vst.msk [vmem:[#allocation15] sm:$0xff] %vm141_vm0, %v2176_v30 }
 0xf23   :  { %2643 = shalt.err (!%p2640_p1)
}
 0xf24   :  { %2191 = dma.vmem_to_hbm [thread:$0]  %s2186_s7, 256, %s3106_s18, [#allocation8], %s2662_s19, %s2662_s19, %s2663_s1  }
 0xf25   :  { %2658 = dma.done.wait [#allocation8], 256  }
 0xf26   :  { %2659 = vsyncadd [#allocation8], 4294967040 }
 0xf27   :  { %2195 = vsyncpa [#allocation7], 1 }
 0xf28   :  { %2196 = vsyncpa [#allocation10], 1 }
 0xf29   :  { %2197 = vsyncpa [#allocation13], 1 }
 0xf2a   :  { %2198 = vsyncpa [#allocation8], 1 }

</bundles_post_ra>
